<compile_context>
chip_gen: v7x
topology: tpu7x:2x2x1
jax: 0.10.0
libtpu: 0.0.40
codegen_flags: <defaults>
</compile_context>

<pallas_src>
import jax
import jax.numpy as jnp
from jax import lax
from jax.experimental import pallas as pl
from jax.experimental.pallas import tpu as pltpu


def _pack_params(params, matmul_dtype):
    """One-time algebraic folding of the module parameters (wrapper-side, free).

    Returns:
      ws  : (C, C)   = Wq @ Wk^T          (query*key weights)
      cb  : (1, C)   = bq @ Wk^T          (key-side bias row, survives the softmax)
      wvg : (C, C)   = gamma * Wv
      bvg : (1, C)   = gamma * bv
      wfc : (C, HID), bfc : (1, HID), wc_row : (1, HID)
    """
    gamma = params["gamma"][0, 0]
    ws = (params["wq_t"] @ params["wk_t"].T).astype(matmul_dtype)      # (C, C)
    cb = (params["bq"] @ params["wk_t"].T).astype(jnp.float32)         # (1, C)
    wvg = (gamma * params["wv_t"]).astype(matmul_dtype)                # (C, C)
    bvg = (gamma * params["bv"]).astype(jnp.float32)                   # (1, C)
    wfc = params["wfc_t"].astype(matmul_dtype)                         # (C, HID)
    bfc = params["bfc"].astype(jnp.float32)                            # (1, HID)
    wc_row = params["wc_t"].T.astype(matmul_dtype)                     # (1, HID)
    return ws, cb, wvg, bvg, wfc, bfc, wc_row


def context_aware_attention(x_nchw, params, *, matmul_dtype=jnp.bfloat16,
                            batch_block=None, fast_transcendentals=False):
    """x_nchw: (B, C, H, W) float32. Returns (B, C) float32."""
    B, C, H, W = x_nchw.shape
    HW = H * W
    HID = params["wfc_t"].shape[1]
    cdt = matmul_dtype
    # In bf16 mode the tolerance regime already allows the EUP approx reciprocal (free slot);
    # in f32 mode keep the exact path for tight reference matching.
    apx = (cdt != jnp.float32)
    # bf16 transcendentals only pay off on v6e/v7x (v5e VPU/EUP have no bf16 path).
    tdt = jnp.bfloat16 if (fast_transcendentals and cdt == jnp.bfloat16) else jnp.float32

    ws, cb, wvg, bvg, wfc, bfc, wc_row = _pack_params(params, cdt)

    # Batch elements per grid step: fill MXU rows / amortize step overhead while keeping the
    # grid length >= 2 so both v7x TensorCores get work.
    if batch_block is None:
        bt = B // 2 if (B >= 2 and B % (B // 2) == 0) else 1
    else:
        bt = batch_block
    assert B % bt == 0, "batch_block must divide B"
    grid_b = B // bt

    # Channel-major (B, C, HW): a free reshape of NCHW; the HW<->C transpose happens in-kernel
    # on a VMEM tile instead of as a standalone HBM-round-trip XLA op.
    x_cm = x_nchw.reshape(B, C, HW)

    def kernel(x_ref, ws_ref, cb_ref, wvg_ref, bvg_ref, wfc_ref, bfc_ref, wc_ref, out_ref):
        f32 = jnp.float32

        def mm(a, b):  # 2-D A @ B on the MXU, f32 accumulation
            return lax.dot_general(a, b, (((1,), (0,)), ((), ())),
                                   preferred_element_type=f32)

        xcm = x_ref[...]                                    # (Bt, C, HW) f32 channel-major
        # In-VMEM transpose (2-D XLU transposes per batch element; concat along sublanes).
        if bt == 1:
            xt2 = xcm[0].T                                  # (HW, C) f32
        else:
            xt2 = jnp.concatenate([xcm[i].T for i in range(bt)], axis=0)  # (Bt*HW, C) f32
        xt = xt2.reshape(bt, HW, C)                         # (Bt, HW, C) f32 (residual uses f32)

        # Hoisted casts: x goes through the VPU cast once per layout, not per matmul.
        xcm_c = xcm.astype(cdt)                             # logits RHS (channel-major)
        xf_c = xt2.astype(cdt)                              # (Bt*HW, C) rows for projections
        xt_c = xf_c.reshape(bt, HW, C)                      # pooling RHS

        # ---- fused-at-parameter-time projections (two lane-aligned dots, batch folded
        #      into M; cb is the key-side bias bq@Wk^T, gamma already folded into wvg/bvg) --
        qk = mm(xf_c, ws_ref[...]) + cb_ref[...]            # (Bt*HW, C) f32
        vg = mm(xf_c, wvg_ref[...]) + bvg_ref[...]          # (Bt*HW, C) f32
        qk_c = qk.reshape(bt, HW, C).astype(cdt)
        vg_c = vg.reshape(bt, HW, C).astype(cdt)

        # ---- self-attention: softmax over keys (dim=-1) ----
        # Channel-major RHS => plain A @ B contraction, no transpose of x inside the dot.
        s = jnp.einsum("bqc,bcj->bqj", qk_c, xcm_c,
                       preferred_element_type=f32)          # (Bt, HW, HW) f32
        s = s - jnp.max(s, axis=-1, keepdims=True)
        p = jnp.exp(s.astype(tdt))                          # unnormalized probabilities
        l = jnp.sum(p, axis=-1, keepdims=True, dtype=f32)   # (Bt, HW, 1) f32 row sums
        p_c = p.astype(cdt)                                 # matmul-dtype copy for the MXU

        pv = jnp.einsum("bqk,bkc->bqc", p_c, vg_c,
                        preferred_element_type=f32)         # (Bt, HW, C) f32
        # Normalize the small (HW, C) result, not the (HW, HW) probs; reciprocal-multiply.
        h = pv * pl.reciprocal(l, approx=apx) + xt          # gamma already folded into vg

        # ---- context head ----
        hfc = jnp.tanh((mm(h.reshape(bt * HW, C).astype(cdt), wfc_ref[...])
                        + bfc_ref[...]).astype(tdt))        # (Bt*HW, HID)
        hfc_c = hfc.reshape(bt, HW, HID).astype(cdt)
        # Lane-major score row per batch element: dense output lanes, lane-axis reductions.
        wc_b = jnp.broadcast_to(wc_ref[...][None], (bt, 1, HID))
        score = jnp.einsum("boh,bqh->boq", wc_b, hfc_c,
                           preferred_element_type=f32)      # (Bt, 1, HW) f32
        score = score - jnp.max(score, axis=-1, keepdims=True)
        e = jnp.exp(score)                                  # (Bt, 1, HW)
        denom = jnp.sum(e, axis=-1, keepdims=True)          # (Bt, 1, 1)

        # Pooling of the ORIGINAL features as a batched (1, HW) @ (HW, C) MXU matmul.
        pooled = jnp.einsum("boq,bqc->boc", e.astype(cdt), xt_c,
                            preferred_element_type=f32)     # (Bt, 1, C)
        out_ref[...] = (pooled * pl.reciprocal(denom, approx=apx)).astype(out_ref.dtype)

    def full_block(arr):
        n = arr.ndim
        return pl.BlockSpec(arr.shape, lambda g, _n=n: (0,) * _n)

    # Generation-aware VMEM budget: double-buffered I/O blocks, weights, f32 intermediates
    # plus their matmul-dtype copies, all lane-padded to 128.
    def _rup(n, m):
        return -(-n // m) * m

    es = jnp.dtype(cdt).itemsize
    Cp, HWp, HIDp = _rup(C, 128), _rup(HW, 128), _rup(HID, 128)
    est = (
        2 * bt * C * HWp * 4                      # input blocks (double-buffered, f32)
        + 2 * bt * 1 * Cp * 4                     # output blocks
        + 2 * ((2 * C * Cp + C * HIDp + HIDp) * es + (2 * Cp + HIDp) * 4)  # weights + biases
        + bt * HW * HWp * (4 + es)                # scores/probs f32 + matmul-dtype copy
        + bt * HW * Cp * (5 * 4 + 4 * es)         # xt, qk, vg, pv, h + casts
        + bt * HW * HIDp * (4 + es)               # hfc + cast
    )
    try:
        vmem_cap = int(pltpu.get_tpu_info().vmem_capacity_bytes) - 8 * 2**20
    except Exception:
        vmem_cap = 48 * 2**20                     # conservative: fits v7x's 64 MiB per TC
    vmem_limit = int(min(vmem_cap, max(32 * 2**20, int(1.3 * est))))
    # NOTE: if 1.3*est approaches vmem_cap (large HW), re-tile flash-style over the key axis.

    out = pl.pallas_call(
        kernel,
        out_shape=jax.ShapeDtypeStruct((B, 1, C), jnp.float32),
        grid=(grid_b,),
        in_specs=[
            pl.BlockSpec((bt, C, HW), lambda g: (g, 0, 0)),
            full_block(ws), full_block(cb), full_block(wvg), full_block(bvg),
            full_block(wfc), full_block(bfc), full_block(wc_row),
        ],
        out_specs=pl.BlockSpec((bt, 1, C), lambda g: (g, 0, 0)),
        compiler_params=pltpu.CompilerParams(
            dimension_semantics=("parallel",),    # batch-block axis shards across v7x TCs
            vmem_limit_bytes=vmem_limit,
        ),
    )(x_cm, ws, cb, wvg, bvg, wfc, bfc, wc_row)
    return out.reshape(B, C)


def reference(x_nchw, params):
    """Pure-JAX mirror of the PyTorch forward pass (unfolded, for correctness checking)."""
    B, C, H, W = x_nchw.shape
    HW = H * W
    x = jnp.transpose(x_nchw, (0, 2, 3, 1)).reshape(B, HW, C)
    q = x @ params["wq_t"] + params["bq"]
    k = x @ params["wk_t"] + params["bk"]
    v = x @ params["wv_t"] + params["bv"]
    s = jnp.einsum("bif,bjf->bij", q, k)
    attn = jax.nn.softmax(s, axis=-1)
    sa = jnp.einsum("bij,bjc->bic", attn, v)
    h = params["gamma"][0, 0] * sa + x
    hfc = jnp.tanh(h @ params["wfc_t"] + params["bfc"])
    score = (hfc @ params["wc_t"])[..., 0]                 # (B, HW)
    a = jax.nn.softmax(score, axis=-1)[..., None]          # (B, HW, 1)
    return jnp.sum(x * a, axis=1)                          # (B, C)


def make_params(key, C, HID):
    F = C // 8
    ks = jax.random.split(key, 9)
    sc = 0.1
    return {
        # conv weights stored already transposed to (in, out) for x @ W
        "wq_t": jax.random.normal(ks[0], (C, F), jnp.float32) * sc,
        "bq":   jax.random.normal(ks[1], (1, F), jnp.float32) * sc,
        "wk_t": jax.random.normal(ks[2], (C, F), jnp.float32) * sc,
        "bk":   jax.random.normal(ks[3], (1, F), jnp.float32) * sc,
        "wv_t": jax.random.normal(ks[4], (C, C), jnp.float32) * sc,
        "bv":   jax.random.normal(ks[5], (1, C), jnp.float32) * sc,
        # PyTorch inits gamma to 0 (self-attn branch would be a no-op);
        # use a deterministic nonzero value so the whole path is exercised.
        "gamma": jnp.array([[0.5]], dtype=jnp.float32),
        "wfc_t": jax.random.normal(ks[6], (C, HID), jnp.float32) * sc,
        "bfc":   jax.random.normal(ks[7], (1, HID), jnp.float32) * sc,
        "wc_t":  jax.random.normal(ks[8], (HID, 1), jnp.float32) * sc,
    }


if __name__ == "__main__":
    B, C, H, W = 4, 16, 8, 8     # in_channels=16 -> feature_dim=2
    HID = 32                     # hidden_dim

    key = jax.random.PRNGKey(0)
    k_x, k_p = jax.random.split(key)
    x = jax.random.normal(k_x, (B, C, H, W), jnp.float32)
    params = make_params(k_p, C, HID)

    ref = jax.block_until_ready(reference(x, params))

    # f32 MXU operands: must match the PyTorch-mirror reference tightly.
    out_f32 = jax.block_until_ready(
        context_aware_attention(x, params, matmul_dtype=jnp.float32))
    assert out_f32.shape == (B, C)
    assert jnp.allclose(out_f32, ref, atol=3e-5, rtol=3e-5), (out_f32, ref)

    # Default path: bf16 MXU operands, f32 accumulation + f32 softmax arithmetic.
    out_bf16 = jax.block_until_ready(context_aware_attention(x, params))
    assert out_bf16.shape == (B, C)
    assert jnp.allclose(out_bf16, ref, atol=5e-2, rtol=5e-2), (out_bf16, ref)

    # bf16 transcendentals (v6e/v7x EUP path): looser sanity check.
    out_fast = jax.block_until_ready(
        context_aware_attention(x, params, fast_transcendentals=True))
    assert out_fast.shape == (B, C)
    assert jnp.allclose(out_fast, ref, atol=1e-1, rtol=1e-1), (out_fast, ref)

    print("KERNEL_OK")
</pallas_src>

<mosaic_0001>
module attributes {stable_mosaic.version = 11 : i64} {
  func.func @kernel(%arg0: i32, %arg1: memref<2x16x64xf32, #tpu.memory_space<vmem>>, %arg2: memref<16x16xf32, #tpu.memory_space<vmem>>, %arg3: memref<1x16xf32, #tpu.memory_space<vmem>>, %arg4: memref<16x16xf32, #tpu.memory_space<vmem>>, %arg5: memref<1x16xf32, #tpu.memory_space<vmem>>, %arg6: memref<16x32xf32, #tpu.memory_space<vmem>>, %arg7: memref<1x32xf32, #tpu.memory_space<vmem>>, %arg8: memref<1x32xf32, #tpu.memory_space<vmem>>, %arg9: memref<2x1x16xf32, #tpu.memory_space<vmem>>) attributes {dimension_semantics = [#tpu.dimension_semantics<parallel>], iteration_bounds = array<i64: 2>, scalar_prefetch = 0 : i64, scratch_operands = 0 : i64, tpu.core_type = #tpu.core_type<tc>, window_params = [{transform_indices = @transform_0, window_bounds = array<i64: 2, 16, 64>}, {pipeline_mode = #tpu.pipeline_mode<synchronous>, transform_indices = @transform_1, window_bounds = array<i64: 16, 16>}, {pipeline_mode = #tpu.pipeline_mode<synchronous>, transform_indices = @transform_2, window_bounds = array<i64: 1, 16>}, {pipeline_mode = #tpu.pipeline_mode<synchronous>, transform_indices = @transform_3, window_bounds = array<i64: 16, 16>}, {pipeline_mode = #tpu.pipeline_mode<synchronous>, transform_indices = @transform_4, window_bounds = array<i64: 1, 16>}, {pipeline_mode = #tpu.pipeline_mode<synchronous>, transform_indices = @transform_5, window_bounds = array<i64: 16, 32>}, {pipeline_mode = #tpu.pipeline_mode<synchronous>, transform_indices = @transform_6, window_bounds = array<i64: 1, 32>}, {pipeline_mode = #tpu.pipeline_mode<synchronous>, transform_indices = @transform_7, window_bounds = array<i64: 1, 32>}, {transform_indices = @transform_8, window_bounds = array<i64: 2, 1, 16>}]} {
    %c0 = arith.constant 0 : index
    %c0_0 = arith.constant 0 : index
    %c0_1 = arith.constant 0 : index
    %0 = vector.load %arg1[%c0, %c0_0, %c0_1] : memref<2x16x64xf32, #tpu.memory_space<vmem>>, vector<2x16x64xf32>
    %1 = vector.extract_strided_slice %0 {offsets = [0, 0, 0], sizes = [1, 16, 64], strides = [1, 1, 1]} : vector<2x16x64xf32> to vector<1x16x64xf32>
    %2 = vector.shape_cast %1 : vector<1x16x64xf32> to vector<16x64xf32>
    %3 = tpu.transpose %2, [1, 0] : vector<16x64xf32> -> vector<64x16xf32>
    %4 = vector.extract_strided_slice %0 {offsets = [1, 0, 0], sizes = [1, 16, 64], strides = [1, 1, 1]} : vector<2x16x64xf32> to vector<1x16x64xf32>
    %5 = vector.shape_cast %4 : vector<1x16x64xf32> to vector<16x64xf32>
    %6 = tpu.transpose %5, [1, 0] : vector<16x64xf32> -> vector<64x16xf32>
    %7 = tpu.concatenate %3, %6 in 0 : vector<64x16xf32>, vector<64x16xf32> -> vector<128x16xf32>
    %8 = vector.shape_cast %7 : vector<128x16xf32> to vector<2x64x16xf32>
    %9 = vector.shape_cast %7 : vector<128x16xf32> to vector<2x64x16xf32>
    %c0_2 = arith.constant 0 : index
    %c0_3 = arith.constant 0 : index
    %10 = vector.load %arg2[%c0_2, %c0_3] : memref<16x16xf32, #tpu.memory_space<vmem>>, vector<16x16xf32>
    %cst = arith.constant dense<0.000000e+00> : vector<128x16xf32>
    %11 = tpu.matmul %7, %10, %cst {dimension_numbers = #tpu.dot_dimension_numbers<[1], [0], [0], [1], [0, 0, 1, 1], [], []>} : vector<128x16xf32>, vector<16x16xf32>, vector<128x16xf32> -> vector<128x16xf32>
    %c0_4 = arith.constant 0 : index
    %c0_5 = arith.constant 0 : index
    %12 = vector.load %arg3[%c0_4, %c0_5] : memref<1x16xf32, #tpu.memory_space<vmem>>, vector<1x16xf32>
    %13 = vector.broadcast %12 : vector<1x16xf32> to vector<128x16xf32>
    %14 = arith.addf %11, %13 : vector<128x16xf32>
    %c0_6 = arith.constant 0 : index
    %c0_7 = arith.constant 0 : index
    %15 = vector.load %arg4[%c0_6, %c0_7] : memref<16x16xf32, #tpu.memory_space<vmem>>, vector<16x16xf32>
    %cst_8 = arith.constant dense<0.000000e+00> : vector<128x16xf32>
    %16 = tpu.matmul %7, %15, %cst_8 {dimension_numbers = #tpu.dot_dimension_numbers<[1], [0], [0], [1], [0, 0, 1, 1], [], []>} : vector<128x16xf32>, vector<16x16xf32>, vector<128x16xf32> -> vector<128x16xf32>
    %c0_9 = arith.constant 0 : index
    %c0_10 = arith.constant 0 : index
    %17 = vector.load %arg5[%c0_9, %c0_10] : memref<1x16xf32, #tpu.memory_space<vmem>>, vector<1x16xf32>
    %18 = vector.broadcast %17 : vector<1x16xf32> to vector<128x16xf32>
    %19 = arith.addf %16, %18 : vector<128x16xf32>
    %20 = vector.shape_cast %14 : vector<128x16xf32> to vector<2x64x16xf32>
    %21 = vector.shape_cast %19 : vector<128x16xf32> to vector<2x64x16xf32>
    "tpu.trace_start"() <{level = 10 : i32, message = "bqc,bcj->bqj"}> : () -> ()
    %cst_11 = arith.constant dense<0.000000e+00> : vector<2x64x64xf32>
    %22 = tpu.matmul %20, %0, %cst_11 {dimension_numbers = #tpu.dot_dimension_numbers<[2], [1], [1], [2], [0, 0, 0, 1, 1, 2], [0], [0]>} : vector<2x64x16xf32>, vector<2x16x64xf32>, vector<2x64x64xf32> -> vector<2x64x64xf32>
    "tpu.trace_stop"() : () -> ()
    %cst_12 = arith.constant dense<0xFF800000> : vector<2x64xf32>
    %23 = vector.multi_reduction <maximumf>, %22, %cst_12 [2] : vector<2x64x64xf32> to vector<2x64xf32>
    %24 = vector.shape_cast %23 : vector<2x64xf32> to vector<2x64x1xf32>
    %25 = vector.broadcast %24 : vector<2x64x1xf32> to vector<2x64x64xf32>
    %26 = arith.subf %22, %25 : vector<2x64x64xf32>
    %27 = math.exp %26 : vector<2x64x64xf32>
    %cst_13 = arith.constant dense<0.000000e+00> : vector<2x64xf32>
    %28 = vector.multi_reduction <add>, %27, %cst_13 [2] : vector<2x64x64xf32> to vector<2x64xf32>
    %29 = vector.shape_cast %28 : vector<2x64xf32> to vector<2x64x1xf32>
    "tpu.trace_start"() <{level = 10 : i32, message = "bqk,bkc->bqc"}> : () -> ()
    %cst_14 = arith.constant dense<0.000000e+00> : vector<2x64x16xf32>
    %30 = tpu.matmul %27, %21, %cst_14 {dimension_numbers = #tpu.dot_dimension_numbers<[2], [1], [1], [2], [0, 0, 0, 1, 1, 2], [0], [0]>} : vector<2x64x64xf32>, vector<2x64x16xf32>, vector<2x64x16xf32> -> vector<2x64x16xf32>
    "tpu.trace_stop"() : () -> ()
    %31 = tpu.reciprocal %29 : vector<2x64x1xf32> -> vector<2x64x1xf32>
    %32 = vector.broadcast %31 : vector<2x64x1xf32> to vector<2x64x16xf32>
    %33 = arith.mulf %30, %32 : vector<2x64x16xf32>
    %34 = arith.addf %33, %8 : vector<2x64x16xf32>
    %35 = vector.shape_cast %34 : vector<2x64x16xf32> to vector<128x16xf32>
    %c0_15 = arith.constant 0 : index
    %c0_16 = arith.constant 0 : index
    %36 = vector.load %arg6[%c0_15, %c0_16] : memref<16x32xf32, #tpu.memory_space<vmem>>, vector<16x32xf32>
    %cst_17 = arith.constant dense<0.000000e+00> : vector<128x32xf32>
    %37 = tpu.matmul %35, %36, %cst_17 {dimension_numbers = #tpu.dot_dimension_numbers<[1], [0], [0], [1], [0, 0, 1, 1], [], []>} : vector<128x16xf32>, vector<16x32xf32>, vector<128x32xf32> -> vector<128x32xf32>
    %c0_18 = arith.constant 0 : index
    %c0_19 = arith.constant 0 : index
    %38 = vector.load %arg7[%c0_18, %c0_19] : memref<1x32xf32, #tpu.memory_space<vmem>>, vector<1x32xf32>
    %39 = vector.broadcast %38 : vector<1x32xf32> to vector<128x32xf32>
    %40 = arith.addf %37, %39 : vector<128x32xf32>
    %41 = math.tanh %40 : vector<128x32xf32>
    %42 = vector.shape_cast %41 : vector<128x32xf32> to vector<2x64x32xf32>
    %c0_20 = arith.constant 0 : index
    %c0_21 = arith.constant 0 : index
    %43 = vector.load %arg8[%c0_20, %c0_21] : memref<1x32xf32, #tpu.memory_space<vmem>>, vector<1x32xf32>
    %44 = vector.shape_cast %43 : vector<1x32xf32> to vector<1x1x32xf32>
    %45 = vector.shape_cast %44 : vector<1x1x32xf32> to vector<1x1x32xf32>
    %46 = vector.broadcast %45 : vector<1x1x32xf32> to vector<2x1x32xf32>
    "tpu.trace_start"() <{level = 10 : i32, message = "boh,bqh->boq"}> : () -> ()
    %cst_22 = arith.constant dense<0.000000e+00> : vector<2x1x64xf32>
    %47 = tpu.matmul %46, %42, %cst_22 {dimension_numbers = #tpu.dot_dimension_numbers<[2], [2], [1], [1], [0, 0, 0, 1, 1, 1], [0], [0]>} : vector<2x1x32xf32>, vector<2x64x32xf32>, vector<2x1x64xf32> -> vector<2x1x64xf32>
    "tpu.trace_stop"() : () -> ()
    %cst_23 = arith.constant dense<0xFF800000> : vector<2x1xf32>
    %48 = vector.multi_reduction <maximumf>, %47, %cst_23 [2] : vector<2x1x64xf32> to vector<2x1xf32>
    %49 = vector.shape_cast %48 : vector<2x1xf32> to vector<2x1x1xf32>
    %50 = vector.broadcast %49 : vector<2x1x1xf32> to vector<2x1x64xf32>
    %51 = arith.subf %47, %50 : vector<2x1x64xf32>
    %52 = math.exp %51 : vector<2x1x64xf32>
    %cst_24 = arith.constant dense<0.000000e+00> : vector<2x1xf32>
    %53 = vector.multi_reduction <add>, %52, %cst_24 [2] : vector<2x1x64xf32> to vector<2x1xf32>
    %54 = vector.shape_cast %53 : vector<2x1xf32> to vector<2x1x1xf32>
    "tpu.trace_start"() <{level = 10 : i32, message = "boq,bqc->boc"}> : () -> ()
    %cst_25 = arith.constant dense<0.000000e+00> : vector<2x1x16xf32>
    %55 = tpu.matmul %52, %9, %cst_25 {dimension_numbers = #tpu.dot_dimension_numbers<[2], [1], [1], [2], [0, 0, 0, 1, 1, 2], [0], [0]>} : vector<2x1x64xf32>, vector<2x64x16xf32>, vector<2x1x16xf32> -> vector<2x1x16xf32>
    "tpu.trace_stop"() : () -> ()
    %56 = tpu.reciprocal %54 : vector<2x1x1xf32> -> vector<2x1x1xf32>
    %57 = vector.broadcast %56 : vector<2x1x1xf32> to vector<2x1x16xf32>
    %58 = arith.mulf %55, %57 : vector<2x1x16xf32>
    %c0_26 = arith.constant 0 : index
    %c0_27 = arith.constant 0 : index
    %c0_28 = arith.constant 0 : index
    %59 = vector.load %arg9[%c0_26, %c0_27, %c0_28] : memref<2x1x16xf32, #tpu.memory_space<vmem>>, vector<2x1x16xf32>
    tpu.vector_store %arg9[%c0_26, %c0_27, %c0_28], %58 {strides = array<i32>} : memref<2x1x16xf32, #tpu.memory_space<vmem>>, vector<2x1x16xf32>,
    return
  }
  func.func @transform_0(%arg0: i32) -> (i32, i32, i32) {
    %c0_i32 = arith.constant 0 : i32
    %c0_i32_0 = arith.constant 0 : i32
    %c0_i32_1 = arith.constant 0 : i32
    return %arg0, %c0_i32, %c0_i32_0 : i32, i32, i32
  }
  func.func @transform_1(%arg0: i32) -> (i32, i32) {
    %c0_i32 = arith.constant 0 : i32
    %c0_i32_0 = arith.constant 0 : i32
    %c0_i32_1 = arith.constant 0 : i32
    return %c0_i32, %c0_i32_0 : i32, i32
  }
  func.func @transform_2(%arg0: i32) -> (i32, i32) {
    %c0_i32 = arith.constant 0 : i32
    %c0_i32_0 = arith.constant 0 : i32
    %c0_i32_1 = arith.constant 0 : i32
    return %c0_i32, %c0_i32_0 : i32, i32
  }
  func.func @transform_3(%arg0: i32) -> (i32, i32) {
    %c0_i32 = arith.constant 0 : i32
    %c0_i32_0 = arith.constant 0 : i32
    %c0_i32_1 = arith.constant 0 : i32
    return %c0_i32, %c0_i32_0 : i32, i32
  }
  func.func @transform_4(%arg0: i32) -> (i32, i32) {
    %c0_i32 = arith.constant 0 : i32
    %c0_i32_0 = arith.constant 0 : i32
    %c0_i32_1 = arith.constant 0 : i32
    return %c0_i32, %c0_i32_0 : i32, i32
  }
  func.func @transform_5(%arg0: i32) -> (i32, i32) {
    %c0_i32 = arith.constant 0 : i32
    %c0_i32_0 = arith.constant 0 : i32
    %c0_i32_1 = arith.constant 0 : i32
    return %c0_i32, %c0_i32_0 : i32, i32
  }
  func.func @transform_6(%arg0: i32) -> (i32, i32) {
    %c0_i32 = arith.constant 0 : i32
    %c0_i32_0 = arith.constant 0 : i32
    %c0_i32_1 = arith.constant 0 : i32
    return %c0_i32, %c0_i32_0 : i32, i32
  }
  func.func @transform_7(%arg0: i32) -> (i32, i32) {
    %c0_i32 = arith.constant 0 : i32
    %c0_i32_0 = arith.constant 0 : i32
    %c0_i32_1 = arith.constant 0 : i32
    return %c0_i32, %c0_i32_0 : i32, i32
  }
  func.func @transform_8(%arg0: i32) -> (i32, i32, i32) {
    %c0_i32 = arith.constant 0 : i32
    %c0_i32_0 = arith.constant 0 : i32
    %c0_i32_1 = arith.constant 0 : i32
    return %arg0, %c0_i32, %c0_i32_0 : i32, i32, i32
  }
}

</mosaic_0001>

<bundles_post_ra>
// kernel: tpu_custom_call.1
= control target key start
LH: loop header
LB: loop body
LE: loop exit
PB: predicated region body
PF: predicated region fallthrough
CT: control target
= control target key end

     0   :  { %13 = vsyncpa [#allocation3], 0  ;;  %s3822_s0 = inlined_call_operand.hbm [shape: f32[4,16,64], index: 0, kind: input, shape index: {}]   ;;  %s3823_s1 = inlined_call_operand.hbm [shape: f32[16,16], index: 1, kind: input, shape index: {}]   ;;  %s3824_s2 = inlined_call_operand.vmem [shape: f32[1,16], index: 2, kind: input, shape index: {}]   ;;  %s3825_s3 = inlined_call_operand.hbm [shape: f32[16,16], index: 3, kind: input, shape index: {}]   ;;  %s3826_s4 = inlined_call_operand.vmem [shape: f32[1,16], index: 4, kind: input, shape index: {}]   ;;  %s3827_s5 = inlined_call_operand.vmem [shape: f32[16,32], index: 5, kind: input, shape index: {}]   ;;  %s3828_s6 = inlined_call_operand.vmem [shape: f32[1,32], index: 6, kind: input, shape index: {}]   ;;  %s3829_s7 = inlined_call_operand.vmem [shape: f32[1,32], index: 7, kind: input, shape index: {}]   ;;  %s3830_s8 = inlined_call_operand.hbm [shape: f32[4,1,16], index: 8, kind: output, shape index: {}]  }
   0x1   :  { %15 = vsyncpa [#allocation3 + $0x1], 0 }
   0x2   :  { %16 = vsyncpa [#allocation6], 0 }
   0x3   :  { %17 = vsyncpa [#allocation4], 0 }
   0x4   :  { %19 = vsyncpa [#allocation4 + $0x1], 0  ;;  %s3196_s27 = smov 0   ;;  %s3198_s28 = smov 0  }
   0x5   :  { %s3200_s29 = smov 0   ;;  %s3202_s30 = smov 0  }
   0x6 LB: > { %s3217_s9 = sadd.s32 4294967295, %s3138_s30   ;;  %s2179_s10 = sadd.s32 4294967294, %s3138_s30   ;;  %s3138_s30 = sphi %s3202_s30, %s3856_s30   ;;  %s3134_s29 = sphi %s3200_s29, %s3855_s29   ;;  %s3130_s28 = sphi %s3198_s28, %s3854_s28   ;;  %s3126_s27 = sphi %s3196_s27, %s3853_s27  }
   0x7   : > { %p45_p0 = scmp.ne.s32.totalorder %s3130_s28, %s3126_s27  ;;  %p3831_p1 = scmp.eq.s32.totalorder %s3217_s9, 0 }
   0x8   : > { %p222_p3 = scmp.eq.s32.totalorder %s2179_s10, 1  ;;  %p2180_p5 = scmp.ge.s32.totalorder %s3138_s30, 1 }
   0x9   : > { %p3226_p4 = por %p3831_p1, %p45_p0  ;;  %p229_p7 = scmp.lt.s32.totalorder %s3138_s30, 3 }
   0xa   : > { %p3231_p6 = por %p222_p3, %p45_p0  ;;  %s3140_s14 = smov [#allocation5]  }
   0xb   : > { %s3836_s11 = scalar_select %p3226_p4, 1, 0 }
   0xc   : > { %s3837_s12 = scalar_select %p3231_p6, 1, 0 }
   0xd   : > { %p3236_p8 = pnand %p2180_p5, %p229_p7  ;;  %s241_s15 = sshll.u32 %s3140_s14, 4  ;;  %s3240_s15 = int_to_ptr.vmem [resolvable:$true] %s241_s15 }
   0xe   : > { %s3141_s17 = smov [#allocation7]   ;;  %s2982_s21 = scalar_lea.hbm %s3823_s1, 256 }
   0xf   : > { %p2816_p9 = pneg %p3236_p8  ;;  %s257_s18 = sshll.u32 %s3141_s17, 4  ;;  %s3251_s18 = int_to_ptr.vmem [resolvable:$true] %s257_s18 }
  0x10   : > { %p2983_p12 = scmp.ne.s32.totalorder %s3823_s1, %s2982_s21  ;;  %p2989_p5 = scmp.lt.u32.totalorder %s2982_s21, %s3823_s1 }
  0x11   : > { %p3247_p11 = pnand %p2816_p9, %p3831_p1 }
  0x13   : > { %p2984_p13 = pneg %p3247_p11 }
  0x15   : > { %p2985_p0 = pnand %p2984_p13, %p2983_p12 }
  0x17   : > { %p2986_p3 = pneg %p2985_p0 }
  0x19   : > { %p2991_p7 = pnand %p2989_p5, %p2986_p3 }
  0x1b   : > { %2994 = shalt.err (!%p2991_p7)
}
  0x1c   : > { %s2995_s26 = scalar_lea.vmem %s3240_s15, 256  ;;  %p3003_p2 = scmp.lt.s32.totalorder %s3240_s15, %s3240_s15 }
  0x1d   : > { %p2996_p9 = scmp.ne.s32.totalorder %s3240_s15, %s2995_s26  ;;  %p3004_p12 = scmp.lt.s32.totalorder %s2995_s26, %s2995_s26 }
  0x1f   : > { %p2998_p10 = pnand %p2996_p9, %p2984_p13  ;;  %p3005_p0 = por %p3004_p12, %p3003_p2 }
  0x21   : > { %p2999_p1 = pneg %p2998_p10 }
  0x23   : > { %p3006_p6 = pnand %p3005_p0, %p2999_p1 }
  0x25   : > { %3009 = shalt.err (!%p3006_p6)
}
  0x26   : > { %s3832_s10 = smov 128   ;;  %s3833_s14 = smov 8  }
  0x27   : > { %2819 = dma.hbm_to_vmem [thread:$0]  (!%p3247_p11), %s3823_s1, 256, %s3240_s15, [#allocation6], %s3832_s10, %s3832_s10, %s3833_s14  }
  0x28   : > { %s3010_s22 = scalar_lea.hbm %s3825_s3, 256 }
  0x29   : > { %p3011_p1 = scmp.ne.s32.totalorder %s3825_s3, %s3010_s22  ;;  %p3017_p10 = scmp.lt.u32.totalorder %s3010_s22, %s3825_s3 }
  0x2b   : > { %p3013_p2 = pnand %p3011_p1, %p2984_p13 }
  0x2d   : > { %p3014_p6 = pneg %p3013_p2 }
  0x2f   : > { %p3019_p3 = pnand %p3017_p10, %p3014_p6 }
  0x31   : > { %3022 = shalt.err (!%p3019_p3)
}
  0x32   : > { %s3023_s15 = scalar_lea.vmem %s3251_s18, 256  ;;  %p3031_p12 = scmp.lt.s32.totalorder %s3251_s18, %s3251_s18 }
  0x33   : > { %p3024_p5 = scmp.ne.s32.totalorder %s3251_s18, %s3023_s15  ;;  %p3032_p0 = scmp.lt.s32.totalorder %s3023_s15, %s3023_s15 }
  0x35   : > { %p3026_p7 = pnand %p3024_p5, %p2984_p13  ;;  %p3033_p1 = por %p3032_p0, %p3031_p12 }
  0x37   : > { %p3027_p9 = pneg %p3026_p7 }
  0x39   : > { %p3034_p2 = pnand %p3033_p1, %p3027_p9 }
  0x3b   : > { %3037 = shalt.err (!%p3034_p2)
}
  0x3c   : > { %2822 = dma.hbm_to_vmem [thread:$0]  (!%p3247_p11), %s3825_s3, 256, %s3251_s18, [#allocation6], %s3832_s10, %s3832_s10, %s3833_s14  }
  0x3d   : > { %s3312_s16 = sadd.s32 1, %s3138_s30   ;;  %s32_s20 = sadd.s32 1, %s3134_s29 }
  0x3e   : > { %s29_s21 = ssub.s32 %s3138_s30, %s3312_s16  ;;  %p39_p13 = scmp.ne.s32.totalorder %s3134_s29, %s3130_s28 }
  0x3f   : > { %p30_p6 = scmp.eq.s32.totalorder %s29_s21, 0  ;;  %p40_p10 = scmp.eq.s32.totalorder %s3138_s30, 0 }
  0x40   : > { %p3840_p3 = scmp.eq.s32.totalorder %s3217_s9, 1  ;;  %p2833_p7 = scmp.lt.s32.totalorder %s3138_s30, 2 }
  0x41   : > { %s3328_s23 = scalar_select %p30_p6, %s3134_s29, %s32_s20  }
  0x42   : > { %p3322_p5 = por %p3840_p3, %p39_p13  ;;  %p41_p9 = por %p40_p10, %p39_p13 }
  0x43   : > { %s283_s24 = sand.u32 1, %s3134_s29   ;;  %s2302_s18 = sshll.u32 %s3138_s30, 9 }
  0x44   : > { %s3841_s22 = scalar_select %p3322_p5, 1, 0 }
  0x45   : > { %s2184_s25 = sshll.u32 %s283_s24, 5  ;;  %s3335_s17 = scalar_lea.hbm %s3822_s0, %s2302_s18 }
  0x46   : > { %s287_s19 = scalar_lea.vmem [#allocation2], %s2184_s25  ;;  %p3339_p11 = pnand %p2833_p7, %p41_p9 }
  0x47   : > { %s295_s21 = sshll.u32 %s287_s19, 4  ;;  %s3343_s10 = scalar_lea.sflag [#allocation3], %s283_s24  ;;  %s3337_s21 = int_to_ptr.vmem [resolvable:$true] %s295_s21 }
  0x48   : > { %s3038_s14 = scalar_lea.hbm %s3335_s17, 512  ;;  %p3040_p0 = pneg %p3339_p11 }
  0x49   : > { %p3039_p12 = scmp.ne.s32.totalorder %s3335_s17, %s3038_s14  ;;  %s3043_s26 = scalar_lea.hbm %s3822_s0, 1024 }
  0x4a   : > { %p3044_p13 = scmp.lt.u32.totalorder %s3335_s17, %s3822_s0  ;;  %p3045_p6 = scmp.lt.u32.totalorder %s3043_s26, %s3038_s14 }
  0x4b   : > { %p3041_p1 = pnand %p3040_p0, %p3039_p12  ;;  %p3047_p3 = scmp.lt.u32.totalorder %s3038_s14, %s3335_s17 }
  0x4c   : > { %p3046_p10 = por %p3045_p6, %p3044_p13 }
  0x4d   : > { %p3042_p2 = pneg %p3041_p1 }
  0x4e   : > { %p3048_p7 = por %p3047_p3, %p3046_p10 }
  0x50   : > { %p3049_p9 = pnand %p3048_p7, %p3042_p2 }
  0x52   : > { %3052 = shalt.err (!%p3049_p9)
}
  0x53   : > { %s3053_s24 = scalar_lea.vmem %s3337_s21, 512  ;;  %s3144_s25 = smov [#allocation2]  }
  0x54   : > { %p3054_p12 = scmp.ne.s32.totalorder %s3337_s21, %s3053_s24  ;;  %s3058_s18 = sshll.u32 %s3144_s25, 4  ;;  %s3059_s18 = int_to_ptr.vmem [resolvable:$false] %s3058_s18 }
  0x55   : > { %s3060_s15 = scalar_lea.vmem %s3059_s18, 1024  ;;  %p3061_p4 = scmp.lt.s32.totalorder %s3337_s21, %s3059_s18 }
  0x56   : > { %p3056_p1 = pnand %p3054_p12, %p3040_p0  ;;  %p3062_p13 = scmp.lt.s32.totalorder %s3060_s15, %s3053_s24 }
  0x58   : > { %p3057_p5 = pneg %p3056_p1  ;;  %p3063_p6 = por %p3062_p13, %p3061_p4 }
  0x5a   : > { %p3064_p10 = pnand %p3063_p6, %p3057_p5 }
  0x5c   : > { %3067 = shalt.err (!%p3064_p10)
}
  0x5d   : > { %s3843_s14 = smov 8   ;;  %s3844_s26 = smov 128  }
  0x5e   : > { %2826 = dma.hbm_to_vmem [thread:$0]  (!%p3339_p11), %s3335_s17, 512, %s3337_s21, %s3343_s10, %s3844_s26, %s3844_s26, %s3843_s14  }
  0x5f   : > { %307 = sbr.rel (%p3236_p8) target bundleno = 1932 (0x78c), region = 52  ;;  %s3377_s19 = sand.u32 (!%p3236_p8), 1, %s3130_s28  }
  0x60   : > { %s2189_s24 = sshll.u32 (!%p3236_p8), %s3377_s19, 5  ;;  %s310_s25 = scalar_lea.sflag (!%p3236_p8), [#allocation3], %s3377_s19 }
  0x61   : > { %s313_s18 = scalar_lea.vmem (!%p3236_p8), [#allocation2], %s2189_s24  ;;  %p3845_p4 = scmp.ne.s32.totalorder (!%p3236_p8), %s3836_s11, 0 }
  0x66   : > { %3113 = dma.done.wait (%p3845_p4), %s310_s25, 512  }
  0x67   : > { %3115 = vsyncadd (%p3845_p4), %s310_s25, 4294966784  ;;  %p3846_p5 = scmp.eq.s32.totalorder %s3217_s9, 0 }
  0x69   : > { %3117 = dma.done.wait (%p3846_p5), [#allocation6], 512   ;;  %p3847_p11 = pmov %p3846_p5 }
  0x6a   : > { %v358_v0 = vld [vmem:[%s313_s18 + $0x10] sm:$0xff]  ;;  %v356_v1 = vld [vmem:[%s313_s18] sm:$0xff]  ;;  %v359_v2 = vld [vmem:[%s313_s18 + $0x18] sm:$0xff]  ;;  %vm433_vm0 = vcmask 130048   ;;  %vm1039_vm1 = vcmask 523264   ;;  %vm3146_vm2 = vmmov 0  }
  0x6b   : > { %3119 = vsyncadd (%p3847_p11), [#allocation6], 4294966784  ;;  %392 = vxpose.xlu1.b32.start [1/2] (short) (narrow) %v358_v0, 64  ;;  %360 = vxpose.xlu0.b32.start [1/2] (short) (narrow) %v356_v1, 64  ;;  %v2706_v3 = vpack.c.bf16 %v359_v2, %v358_v0  ;;  %v424_v4 = vld [vmem:[#allocation5] sm:$0xff]  ;;  %v425_v5 = vld [vmem:[#allocation5 + $0x8] sm:$0xff] }
  0x6c   : > { %v357_v6 = vld [vmem:[%s313_s18 + $0x8] sm:$0xff]  ;;  %v2694_v7 = vpack.c.bf16 %v425_v5, %v424_v4  ;;  %v627_v9 = vld [vmem:[#allocation7] sm:$0xff]  ;;  %v628_v10 = vld [vmem:[#allocation7 + $0x8] sm:$0xff]  ;;  %vm1709_vm3 = vcmask 261120   ;;  %vm1901_vm5 = vcmask 516096   ;;  %s2192_s11 = sshll.u32 %s3377_s19, 1 }
  0x6d   : > { %v2702_v8 = vpack.c.bf16 %v357_v6, %v356_v1  ;;  %v2698_v11 = vpack.c.bf16 %v628_v10, %v627_v9  ;;  %v3488_v28 = vld [vmem:[%s3824_s2] ss:$0 sm:$0xff]  ;;  %vm3694_vm4 = vmpackc.low %vm1709_vm3, %vm1709_vm3  ;;  %vm2070_vm6 = vcmask 122880   ;;  %s353_s13 = scalar_lea.vmem [#allocation8], %s2192_s11  ;;  %s2303_s17 = sshll.u32 %s3217_s9, 5 }
  0x6e   : > { %2695 = vmatprep.subr.bf16.mxu0 %v2694_v7  ;;  %2802 = vmatprep.subr.bf16.mxu1 %v2694_v7  ;;  %v3506_v48 = vld [vmem:[%s3826_s4] ss:$0 sm:$0xff]  ;;  %s2087_s10 = sshll.u32 %s353_s13, 4  ;;  %s3778_s15 = scalar_lea.hbm %s3830_s8, %s2303_s17  ;;  %s3773_s10 = int_to_ptr.vmem [resolvable:$true] %s2087_s10 }
  0x6f   : > { %393 = vxpose.xlu1.b32.end [2/2] (short) (narrow) %v359_v2, 64  ;;  %361 = vxpose.xlu0.b32.end [2/2] (short) (narrow) %v357_v6, 64  ;;  %s2074_s14 = scalar_lea.sflag [#allocation4], %s3377_s19  ;;  %s3068_s26 = scalar_lea.vmem %s3773_s10, 32 }
  0x70   : > { %2697 = vmatpush3.bf16.msra.mxu0 %v2694_v7  ;;  %2803 = vmatpush3.bf16.msra.mxu1 %v2694_v7  ;;  %p3069_p8 = scmp.ne.s32.totalorder %s3773_s10, %s3068_s26  ;;  %p3850_p0 = scmp.ne.s32.totalorder %s3841_s22, 0 }
  0x71   : > { %2703 = vmatprep.subr.bf16.mxu0 %v2702_v8  ;;  %2699 = vmatprep.subr.bf16.mxu1 %v2698_v11  ;;  %s3148_s9 = smov [#allocation8]  }
  0x72   : > { %p3070_p2 = pnand %p3069_p8, %p3850_p0  ;;  %s3072_s24 = sshll.u32 %s3148_s9, 4  ;;  %s3073_s24 = int_to_ptr.vmem [resolvable:$false] %s3072_s24 }
  0x73   : > { %s3074_s25 = scalar_lea.vmem %s3073_s24, 64  ;;  %p3075_p7 = scmp.lt.s32.totalorder %s3773_s10, %s3073_s24 }
  0x74   : > { %p3071_p3 = pneg %p3070_p2  ;;  %p3076_p9 = scmp.lt.s32.totalorder %s3074_s25, %s3068_s26 }
  0x76   : > { %p3077_p12 = por %p3076_p9, %p3075_p7 }
  0x78   : > { %p3078_p1 = pnand %p3077_p12, %p3071_p3 }
  0xeb   : > { %v3389_v12 = vpop.trf.xlu1  ;;  %v3391_v13 = vpop.trf.xlu0 }
  0xec   : > { %2450 = vmatprep.mubr.msk.f32.mxu0 %vm433_vm0, %v3391_v13 }
  0xef   : > { %v3395_v14 = vpop.trf.xlu1  ;;  %v3397_v15 = vpop.trf.xlu0 }
  0xf0   : > { %2451 = vmatmul.mubr.msk.f32.vlgmr.msra.gmra.mrb[0].mxu0 %vm433_vm0, %v3397_v15 }
  0xf1   : > { %2705 = vmatpush3.bf16.msra.mxu0 %v2702_v8 }
  0xf3   : > { %v3401_v16 = vpop.trf.xlu1  ;;  %v3403_v17 = vpop.trf.xlu0 }
  0xf4   : > { %2453 = vmatprep.mubr.msk.f32.mxu0 %vm433_vm0, %v3403_v17 }
  0xf7   : > { %v3407_v18 = vpop.trf.xlu1  ;;  %v3409_v19 = vpop.trf.xlu0 }
  0xf8   : > { %2454 = vmatmul.mubr.msk.f32.gmra.mrb[2].mxu0 %vm433_vm0, %v3409_v19 }
  0xfb   : > { %v3413_v20 = vpop.trf.xlu1  ;;  %v3415_v21 = vpop.trf.xlu0 }
  0xfc   : > { %2456 = vmatprep.mubr.msk.f32.mxu0 %vm433_vm0, %v3415_v21  ;;  %2468 = vmatprep.mubr.msk.f32.mxu1 %vm433_vm0, %v3413_v20 }
  0xff   : > { %v3421_v22 = vpop.trf.xlu1  ;;  %v3423_v23 = vpop.trf.xlu0 }
 0x100   : > { %2457 = vmatmul.mubr.msk.f32.gmra.mrb[4].mxu0 %vm433_vm0, %v3423_v23  ;;  %2469 = vmatmul.mubr.msk.f32.vlgmr.msra.gmra.mrb[0].mxu1 %vm433_vm0, %v3421_v22 }
 0x101   : > { %2701 = vmatpush3.bf16.msra.mxu1 %v2698_v11 }
 0x102   : > { %2707 = vmatprep.subr.bf16.mxu1 %v2706_v3 }
 0x103   : > { %v3429_v24 = vpop.trf.xlu1  ;;  %v3431_v25 = vpop.trf.xlu0 }
 0x104   : > { %2459 = vmatprep.mubr.msk.f32.mxu0 %vm433_vm0, %v3431_v25  ;;  %2471 = vmatprep.mubr.msk.f32.mxu1 %vm433_vm0, %v3429_v24 }
 0x107   : > { %v3437_v26 = vpop.trf.xlu1  ;;  %v3439_v27 = vpop.trf.xlu0 }
 0x108   : > { %2460 = vmatmul.mubr.msk.f32.gmra.mrb[6].mxu0 %vm433_vm0, %v3439_v27  ;;  %2472 = vmatmul.mubr.msk.f32.gmra.mrb[2].mxu1 %vm433_vm0, %v3437_v26 }
 0x109   : > { %2462 = vmatprep.mubr.msk.f32.mxu0 %vm433_vm0, %v3389_v12  ;;  %2478 = vmatprep.mubr.msk.f32.mxu1 %vm433_vm0, %v3391_v13 }
 0x10c   : > { %2463 = vmatmul.mubr.msk.f32.gmra.mrb[8].mxu0 %vm433_vm0, %v3395_v14  ;;  %2479 = vmatmul.mubr.msk.f32.vlgmr.msra.gmra.mrb[4].mxu1 %vm433_vm0, %v3397_v15 }
 0x10d   : > { %2481 = vmatprep.mubr.msk.f32.mxu1 %vm433_vm0, %v3403_v17  ;;  %2465 = vmatprep.mubr.msk.f32.mxu0 %vm433_vm0, %v3401_v16 }
 0x10e   : > { %2709 = vmatpush3.bf16.msra.mxu1 %v2706_v3 }
 0x110   : > { %2466 = vmatmul.mubr.msk.f32.gmra.mrb[10].mxu0 %vm433_vm0, %v3407_v18  ;;  %2482 = vmatmul.mubr.msk.f32.gmra.mrb[6].mxu1 %vm433_vm0, %v3409_v19 }
 0x111   : > { %2484 = vmatprep.mubr.msk.f32.mxu1 %vm433_vm0, %v3415_v21 }
 0x114   : > { %2485 = vmatmul.mubr.msk.f32.gmra.mrb[8].mxu1 %vm433_vm0, %v3423_v23 }
 0x115   : > { %2487 = vmatprep.mubr.msk.f32.mxu1 %vm433_vm0, %v3431_v25 }
 0x118   : > { %2488 = vmatmul.mubr.msk.f32.gmra.mrb[10].mxu1 %vm433_vm0, %v3439_v27 }
 0x119   : > { %2490 = vmatprep.mubr.msk.f32.mxu1 %vm433_vm0, %v3389_v12 }
 0x11c   : > { %2491 = vmatmul.mubr.msk.f32.gmra.mrb[12].mxu1 %vm433_vm0, %v3395_v14 }
 0x11d   : > { %2493 = vmatprep.mubr.msk.f32.mxu1 %vm433_vm0, %v3401_v16 }
 0x120   : > { %2494 = vmatmul.mubr.msk.f32.gmra.mrb[14].mxu1 %vm433_vm0, %v3407_v18 }
 0x121   : > { %2496 = vmatprep.mubr.msk.f32.mxu1 %vm433_vm0, %v3413_v20 }
 0x124   : > { %2497 = vmatmul.mubr.msk.f32.gmra.mrb[16].mxu1 %vm433_vm0, %v3421_v22 }
 0x125   : > { %2499 = vmatprep.mubr.msk.f32.mxu1 %vm433_vm0, %v3429_v24 }
 0x128   : > { %2500 = vmatmul.mubr.msk.f32.gmra.mrb[18].mxu1 %vm433_vm0, %v3437_v26 }
 0x1c3   : > { %v2452_v29 = vpop.f32.mrb[0].mxu0 }
 0x1c4   : > { %v548_v30 = vpop.f32.mrb[1].mxu0  ;;  %v554_v32 = vadd.f32 %v2452_v29, %v3488_v28 }
 0x1c5   : > { %v549_v31 = vadd.f32 %v3488_v28, %v548_v30 }
 0x1c7   : > { %2506 = vmatprep.mubr.msk.f32.mxu0 %vm433_vm0, %v549_v31 }
 0x1c8   : > { %2507 = vmatmul.mubr.msk.f32.vlgmr.msra.gmra.mrb[12].mxu0 %vm433_vm0, %v554_v32 }
 0x1cb   : > { %v2455_v33 = vpop.f32.mrb[2].mxu0 }
 0x1cc   : > { %v558_v34 = vpop.f32.mrb[3].mxu0  ;;  %v564_v36 = vadd.f32 %v2455_v33, %v3488_v28 }
 0x1cd   : > { %v559_v35 = vadd.f32 %v3488_v28, %v558_v34 }
 0x1cf   : > { %2509 = vmatprep.mubr.msk.f32.mxu0 %vm433_vm0, %v559_v35 }
 0x1d0   : > { %2510 = vmatmul.mubr.msk.f32.gmra.mrb[14].mxu0 %vm433_vm0, %v564_v36 }
 0x1d3   : > { %v2458_v37 = vpop.f32.mrb[4].mxu0  ;;  %v2470_v38 = vpop.f32.mrb[0].mxu1 }
 0x1d4   : > { %v568_v39 = vpop.f32.mrb[5].mxu0  ;;  %v608_v40 = vpop.f32.mrb[1].mxu1  ;;  %v574_v42 = vadd.f32 %v2458_v37, %v3488_v28  ;;  %v614_v6 = vadd.f32 %v2470_v38, %v3488_v28 }
 0x1d5   : > { %v569_v41 = vadd.f32 %v3488_v28, %v568_v39  ;;  %v609_v1 = vadd.f32 %v3488_v28, %v608_v40 }
 0x1d7   : > { %2512 = vmatprep.mubr.msk.f32.mxu0 %vm433_vm0, %v569_v41 }
 0x1d8   : > { %2513 = vmatmul.mubr.msk.f32.gmra.mrb[16].mxu0 %vm433_vm0, %v574_v42 }
 0x1db   : > { %v2461_v43 = vpop.f32.mrb[6].mxu0  ;;  %v2473_v44 = vpop.f32.mrb[2].mxu1 }
 0x1dc   : > { %v578_v45 = vpop.f32.mrb[7].mxu0  ;;  %v618_v46 = vpop.f32.mrb[3].mxu1  ;;  %v584_v49 = vadd.f32 %v2461_v43, %v3488_v28  ;;  %v624_v30 = vadd.f32 %v2473_v44, %v3488_v28 }
 0x1dd   : > { %v579_v47 = vadd.f32 %v3488_v28, %v578_v45  ;;  %v619_v9 = vadd.f32 %v3488_v28, %v618_v46 }
 0x1df   : > { %v2464_v50 = vpop.f32.mrb[8].mxu0  ;;  %v2480_v51 = vpop.f32.mrb[4].mxu1  ;;  %2515 = vmatprep.mubr.msk.f32.mxu0 %vm433_vm0, %v579_v47 }
 0x1e0   : > { %v708_v52 = vadd.f32 %v2480_v51, %v3506_v48  ;;  %v588_v53 = vpop.f32.mrb[9].mxu0  ;;  %v702_v54 = vpop.f32.mrb[5].mxu1  ;;  %2516 = vmatmul.mubr.msk.f32.gmra.mrb[18].mxu0 %vm433_vm0, %v584_v49  ;;  %v594_v57 = vadd.f32 %v2464_v50, %v3488_v28 }
 0x1e1   : > { %v589_v55 = vadd.f32 %v3488_v28, %v588_v53  ;;  %v703_v56 = vadd.f32 %v3506_v48, %v702_v54 }
 0x1e3   : > { %v2710_v58 = vpack.c.bf16 %v708_v52, %v703_v56  ;;  %v2467_v59 = vpop.f32.mrb[10].mxu0  ;;  %v2483_v60 = vpop.f32.mrb[6].mxu1  ;;  %2522 = vmatprep.mubr.msk.f32.mxu1 %vm433_vm0, %v589_v55 }
 0x1e4   : > { %v604_v61 = vadd.f32 %v2467_v59, %v3488_v28  ;;  %v718_v62 = vadd.f32 %v2483_v60, %v3506_v48  ;;  %v598_v63 = vpop.f32.mrb[11].mxu0  ;;  %v712_v0 = vpop.f32.mrb[7].mxu1  ;;  %2523 = vmatmul.mubr.msk.f32.vlgmr.msra.gmra.mrb[20].mxu1 %vm433_vm0, %v594_v57 }
 0x1e5   : > { %v599_v2 = vadd.f32 %v3488_v28, %v598_v63  ;;  %v713_v3 = vadd.f32 %v3506_v48, %v712_v0  ;;  %2711 = vmatprep.subr.bf16.mxu0 %v2710_v58 }
 0x1e6   : > { %2713 = vmatpush3.bf16.msra.mxu0 %v2710_v58 }
 0x1e7   : > { %v2714_v4 = vpack.c.bf16 %v718_v62, %v713_v3  ;;  %v2486_v5 = vpop.f32.mrb[8].mxu1  ;;  %2525 = vmatprep.mubr.msk.f32.mxu1 %vm433_vm0, %v599_v2 }
 0x1e8   : > { %v728_v7 = vadd.f32 %v2486_v5, %v3506_v48  ;;  %v722_v8 = vpop.f32.mrb[9].mxu1  ;;  %2526 = vmatmul.mubr.msk.f32.gmra.mrb[22].mxu1 %vm433_vm0, %v604_v61 }
 0x1e9   : > { %v723_v10 = vadd.f32 %v3506_v48, %v722_v8  ;;  %2715 = vmatprep.subr.bf16.mxu0 %v2714_v4  ;;  %2528 = vmatprep.mubr.msk.f32.mxu1 %vm433_vm0, %v609_v1 }
 0x1ea   : > { %2717 = vmatpush3.bf16.msra.mxu0 %v2714_v4 }
 0x1eb   : > { %v2718_v11 = vpack.c.bf16 %v728_v7, %v723_v10  ;;  %v2489_v29 = vpop.f32.mrb[10].mxu1 }
 0x1ec   : > { %v738_v31 = vadd.f32 %v2489_v29, %v3506_v48  ;;  %v732_v32 = vpop.f32.mrb[11].mxu1  ;;  %2529 = vmatmul.mubr.msk.f32.gmra.mrb[24].mxu1 %vm433_vm0, %v614_v6 }
 0x1ed   : > { %v733_v33 = vadd.f32 %v3506_v48, %v732_v32  ;;  %2719 = vmatprep.subr.bf16.mxu0 %v2718_v11  ;;  %2531 = vmatprep.mubr.msk.f32.mxu1 %vm433_vm0, %v619_v9 }
 0x1ee   : > { %2721 = vmatpush3.bf16.msra.mxu0 %v2718_v11 }
 0x1ef   : > { %v2722_v34 = vpack.c.bf16 %v738_v31, %v733_v33  ;;  %v2492_v35 = vpop.f32.mrb[12].mxu1 }
 0x1f0   : > { %v748_v36 = vadd.f32 %v2492_v35, %v3506_v48  ;;  %v742_v37 = vpop.f32.mrb[13].mxu1  ;;  %2532 = vmatmul.mubr.msk.f32.gmra.mrb[26].mxu1 %vm433_vm0, %v624_v30 }
 0x1f1   : > { %v743_v28 = vadd.f32 %v3506_v48, %v742_v37  ;;  %2723 = vmatprep.subr.bf16.mxu0 %v2722_v34 }
 0x1f2   : > { %2725 = vmatpush3.bf16.msra.mxu0 %v2722_v34 }
 0x1f3   : > { %v2726_v38 = vpack.c.bf16 %v748_v36, %v743_v28  ;;  %v2495_v39 = vpop.f32.mrb[14].mxu1 }
 0x1f4   : > { %v758_v40 = vadd.f32 %v2495_v39, %v3506_v48  ;;  %v752_v41 = vpop.f32.mrb[15].mxu1 }
 0x1f5   : > { %v753_v42 = vadd.f32 %v3506_v48, %v752_v41  ;;  %2727 = vmatprep.subr.bf16.mxu1 %v2726_v38 }
 0x1f6   : > { %2729 = vmatpush3.bf16.msra.mxu1 %v2726_v38 }
 0x1f7   : > { %v2730_v43 = vpack.c.bf16 %v758_v40, %v753_v42  ;;  %v2498_v44 = vpop.f32.mrb[16].mxu1 }
 0x1f8   : > { %v768_v45 = vadd.f32 %v2498_v44, %v3506_v48  ;;  %v762_v46 = vpop.f32.mrb[17].mxu1 }
 0x1f9   : > { %v763_v47 = vadd.f32 %v3506_v48, %v762_v46  ;;  %2731 = vmatprep.subr.bf16.mxu1 %v2730_v43 }
 0x1fa   : > { %2733 = vmatpush3.bf16.msra.mxu1 %v2730_v43 }
 0x1fb   : > { %v2734_v49 = vpack.c.bf16 %v768_v45, %v763_v47  ;;  %v2501_v50 = vpop.f32.mrb[18].mxu1 }
 0x1fc   : > { %v778_v51 = vadd.f32 %v2501_v50, %v3506_v48  ;;  %v772_v52 = vpop.f32.mrb[19].mxu1 }
 0x1fd   : > { %v773_v53 = vadd.f32 %v3506_v48, %v772_v52  ;;  %2735 = vmatprep.subr.bf16.mxu1 %v2734_v49 }
 0x1fe   : > { %2737 = vmatpush3.bf16.msra.mxu1 %v2734_v49 }
 0x1ff   : > { %v2738_v54 = vpack.c.bf16 %v778_v51, %v773_v53 }
 0x201   : > { %2739 = vmatprep.subr.bf16.mxu1 %v2738_v54 }
 0x202   : > { %2741 = vmatpush3.bf16.msra.mxu1 %v2738_v54 }
 0x29b   : > { %v2508_v55 = vpop.f32.mrb[12].mxu0 }
 0x29c   : > { %v871_v56 = vpop.f32.mrb[13].mxu0  ;;  %v1043_v57 = vsel %vm1039_vm1, %v2508_v55, -inf }
 0x29d   : > { %1044 = vmax.xlane.f32.xlu1 %v1043_v57  ;;  %v1040_v58 = vsel %vm1039_vm1, %v871_v56, -inf }
 0x29e   : > { %1041 = vmax.xlane.f32.xlu0 %v1040_v58 }
 0x2a3   : > { %v2511_v59 = vpop.f32.mrb[14].mxu0 }
 0x2a4   : > { %v881_v60 = vpop.f32.mrb[15].mxu0  ;;  %v1049_v48 = vsel %vm1039_vm1, %v2511_v59, -inf }
 0x2a5   : > { %v1046_v61 = vsel %vm1039_vm1, %v881_v60, -inf }
 0x2a6   : > { %1047 = vmax.xlane.f32.xlu1 %v1046_v61 }
 0x2aa   : > { %1050 = vmax.xlane.f32.xlu1 %v1049_v48 }
 0x2ab   : > { %v3547_v62 = vpop.f32.mrb[16].mxu0 }
 0x2ac   : > { %v3549_v63 = vpop.f32.mrb[17].mxu0  ;;  %v1055_v0 = vsel %vm1039_vm1, %v3547_v62, -inf }
 0x2ad   : > { %v1052_v1 = vsel %vm1039_vm1, %v3549_v63, -inf }
 0x2ae   : > { %1056 = vmax.xlane.f32.xlu1 %v1055_v0  ;;  %1053 = vmax.xlane.f32.xlu0 %v1052_v1 }
 0x2b3   : > { %v3555_v2 = vpop.f32.mrb[18].mxu0 }
 0x2b4   : > { %v3557_v3 = vpop.f32.mrb[19].mxu0  ;;  %v1061_v4 = vsel %vm1039_vm1, %v3555_v2, -inf }
 0x2b5   : > { %1062 = vmax.xlane.f32.xlu1 %v1061_v4  ;;  %v1058_v5 = vsel %vm1039_vm1, %v3557_v3, -inf }
 0x2b6   : > { %1059 = vmax.xlane.f32.xlu0 %v1058_v5 }
 0x2b7   : > { %v3563_v6 = vpop.f32.mrb[20].mxu1 }
 0x2b8   : > { %v3565_v7 = vpop.f32.mrb[21].mxu1  ;;  %v1067_v8 = vsel %vm1039_vm1, %v3563_v6, -inf }
 0x2b9   : > { %1068 = vmax.xlane.f32.xlu1 %v1067_v8  ;;  %v1064_v9 = vsel %vm1039_vm1, %v3565_v7, -inf }
 0x2ba   : > { %1065 = vmax.xlane.f32.xlu0 %v1064_v9 }
 0x2bb   : > { %v3571_v10 = vpop.f32.mrb[22].mxu1 }
 0x2bc   : > { %v3573_v11 = vpop.f32.mrb[23].mxu1  ;;  %v1073_v29 = vsel %vm1039_vm1, %v3571_v10, -inf }
 0x2bd   : > { %1074 = vmax.xlane.f32.xlu1 %v1073_v29  ;;  %v1070_v30 = vsel %vm1039_vm1, %v3573_v11, -inf }
 0x2be   : > { %1071 = vmax.xlane.f32.xlu0 %v1070_v30 }
 0x2bf   : > { %v3579_v31 = vpop.f32.mrb[24].mxu1 }
 0x2c0   : > { %v3581_v32 = vpop.f32.mrb[25].mxu1  ;;  %v1079_v33 = vsel %vm1039_vm1, %v3579_v31, -inf }
 0x2c1   : > { %1080 = vmax.xlane.f32.xlu1 %v1079_v33  ;;  %v1076_v34 = vsel %vm1039_vm1, %v3581_v32, -inf }
 0x2c2   : > { %1077 = vmax.xlane.f32.xlu0 %v1076_v34 }
 0x2c3   : > { %v3587_v35 = vpop.f32.mrb[26].mxu1 }
 0x2c4   : > { %v3589_v36 = vpop.f32.mrb[27].mxu1  ;;  %v1085_v37 = vsel %vm1039_vm1, %v3587_v35, -inf }
 0x2c5   : > { %1086 = vmax.xlane.f32.xlu1 %v1085_v37  ;;  %v1082_v28 = vsel %vm1039_vm1, %v3589_v36, -inf }
 0x2c6   : > { %1083 = vmax.xlane.f32.xlu0 %v1082_v28 }
 0x32a   : > { %v1045_v38 = vpop.xlane.xlu1 %1044 }
 0x32b   : > { %v1089_v39 = vsub.f32 %v2508_v55, %v1045_v38  ;;  %v1042_v40 = vpop.xlane.xlu0 %1041 }
 0x32c   : > { %v1088_v41 = vsub.f32 %v871_v56, %v1042_v40 }
 0x32d   : > { %v1106_v42 = vmul.f32 1.442695, %v1089_v39 }
 0x32e   : > { %v1104_v43 = vmul.f32 1.442695, %v1088_v41 }
 0x32f   : > { %2878 = vpow2.f32 %v1106_v42 }
 0x330   : > { %2880 = vpow2.f32 %v1104_v43 }
 0x333   : > { %v1048_v44 = vpop.xlane.xlu1 %1047 }
 0x334   : > { %v1090_v45 = vsub.f32 %v881_v60, %v1048_v44 }
 0x336   : > { %v1108_v46 = vmul.f32 1.442695, %v1090_v45 }
 0x337   : > { %v1051_v47 = vpop.xlane.xlu1 %1050 }
 0x338   : > { %2882 = vpow2.f32 %v1108_v46  ;;  %v1091_v49 = vsub.f32 %v2511_v59, %v1051_v47 }
 0x339   : > { %v2879_v50 = vpop.eup %2878 }
 0x33a   : > { %v2881_v51 = vpop.eup %2880  ;;  %v1110_v52 = vmul.f32 1.442695, %v1091_v49  ;;  %v1139_v53 = vsel %vm1039_vm1, %v2879_v50, 0.0 }
 0x33b   : > { %2550 = vmatprep.mubr.msk.f32.mxu0 %vm1039_vm1, %v2881_v51  ;;  %v1057_v54 = vpop.xlane.xlu1 %1056  ;;  %v1054_v55 = vpop.xlane.xlu0 %1053  ;;  %1140 = vadd.xlane.f32.xlu1 %v1139_v53  ;;  %v1136_v56 = vsel %vm1039_vm1, %v2881_v51, 0.0 }
 0x33c   : > { %2884 = vpow2.f32 %v1110_v52  ;;  %v1093_v57 = vsub.f32 %v3547_v62, %v1057_v54  ;;  %v1092_v58 = vsub.f32 %v3549_v63, %v1054_v55  ;;  %2551 = vmatmul.mubr.msk.f32.vlgmr.msra.gmra.mrb[20].mxu0 %vm1039_vm1, %v2879_v50  ;;  %1137 = vadd.xlane.f32.xlu0 %v1136_v56 }
 0x33e   : > { %v1114_v59 = vmul.f32 1.442695, %v1093_v57  ;;  %v1112_v60 = vmul.f32 1.442695, %v1092_v58 }
 0x340   : > { %2886 = vpow2.f32 %v1114_v59 }
 0x341   : > { %2888 = vpow2.f32 %v1112_v60 }
 0x342   : > { %v2883_v61 = vpop.eup %2882  ;;  %v1063_v48 = vpop.xlane.xlu1 %1062 }
 0x343   : > { %v1095_v0 = vsub.f32 %v3555_v2, %v1063_v48  ;;  %2553 = vmatprep.mubr.msk.f32.mxu0 %vm1039_vm1, %v2883_v61  ;;  %v1060_v1 = vpop.xlane.xlu0 %1059  ;;  %v1142_v4 = vsel %vm1039_vm1, %v2883_v61, 0.0 }
 0x344   : > { %v1094_v62 = vsub.f32 %v3557_v3, %v1060_v1  ;;  %1143 = vadd.xlane.f32.xlu0 %v1142_v4 }
 0x345   : > { %v1118_v63 = vmul.f32 1.442695, %v1095_v0 }
 0x346   : > { %v2885_v5 = vpop.eup %2884  ;;  %v1116_v8 = vmul.f32 1.442695, %v1094_v62  ;;  %v1069_v9 = vpop.xlane.xlu1 %1068 }
 0x347   : > { %2890 = vpow2.f32 %v1118_v63  ;;  %v1097_v29 = vsub.f32 %v3563_v6, %v1069_v9  ;;  %2554 = vmatmul.mubr.msk.f32.gmra.mrb[22].mxu0 %vm1039_vm1, %v2885_v5  ;;  %v1066_v30 = vpop.xlane.xlu0 %1065  ;;  %v1145_v2 = vsel %vm1039_vm1, %v2885_v5, 0.0 }
 0x348   : > { %2892 = vpow2.f32 %v1116_v8  ;;  %v1096_v33 = vsub.f32 %v3565_v7, %v1066_v30  ;;  %1146 = vadd.xlane.f32.xlu1 %v1145_v2  ;;  %v1491_v30 = vld [vmem:[%s3827_s5 + $0x8] sm:$0xff] }
 0x349   : > { %v1122_v34 = vmul.f32 1.442695, %v1097_v29  ;;  %v1490_v29 = vld [vmem:[%s3827_s5] sm:$0xff] }
 0x34a   : > { %v2887_v37 = vpop.eup %2886  ;;  %v1120_v3 = vmul.f32 1.442695, %v1096_v33  ;;  %v1075_v28 = vpop.xlane.xlu1 %1074  ;;  %v2742_v2 = vpack.c.bf16 %v1491_v30, %v1490_v29 }
 0x34b   : > { %v2889_v38 = vpop.eup %2888  ;;  %2894 = vpow2.f32 %v1122_v34  ;;  %v1099_v39 = vsub.f32 %v3571_v10, %v1075_v28  ;;  %v1072_v40 = vpop.xlane.xlu0 %1071  ;;  %v1151_v6 = vsel %vm1039_vm1, %v2887_v37, 0.0 }
 0x34c   : > { %2896 = vpow2.f32 %v1120_v3  ;;  %2556 = vmatprep.mubr.msk.f32.mxu0 %vm1039_vm1, %v2889_v38  ;;  %v1098_v41 = vsub.f32 %v3573_v11, %v1072_v40  ;;  %1152 = vadd.xlane.f32.xlu1 %v1151_v6  ;;  %v1148_v7 = vsel %vm1039_vm1, %v2889_v38, 0.0 }
 0x34d   : > { %v1126_v42 = vmul.f32 1.442695, %v1099_v39  ;;  %2557 = vmatmul.mubr.msk.f32.gmra.mrb[24].mxu0 %vm1039_vm1, %v2887_v37  ;;  %1149 = vadd.xlane.f32.xlu0 %v1148_v7 }
 0x34e   : > { %v1124_v43 = vmul.f32 1.442695, %v1098_v41  ;;  %v1081_v44 = vpop.xlane.xlu1 %1080  ;;  %2743 = vmatprep.subr.bf16.mxu0 %v2742_v2 }
 0x34f   : > { %2898 = vpow2.f32 %v1126_v42  ;;  %v1101_v10 = vsub.f32 %v3579_v31, %v1081_v44  ;;  %v1078_v45 = vpop.xlane.xlu0 %1077  ;;  %2745 = vmatpush3.bf16.msra.mxu0 %v2742_v2 }
 0x350   : > { %2900 = vpow2.f32 %v1124_v43  ;;  %v1100_v46 = vsub.f32 %v3581_v32, %v1078_v45 }
 0x351   : > { %v2891_v47 = vpop.eup %2890  ;;  %v1130_v49 = vmul.f32 1.442695, %v1101_v10 }
 0x352   : > { %v2893_v50 = vpop.eup %2892  ;;  %v1128_v11 = vmul.f32 1.442695, %v1100_v46  ;;  %v1087_v51 = vpop.xlane.xlu1 %1086  ;;  %v1157_v52 = vsel %vm1039_vm1, %v2891_v47, 0.0 }
 0x353   : > { %2902 = vpow2.f32 %v1130_v49  ;;  %v1103_v53 = vsub.f32 %v3587_v35, %v1087_v51  ;;  %1158 = vadd.xlane.f32.xlu1 %v1157_v52  ;;  %2559 = vmatprep.mubr.msk.f32.mxu0 %vm1039_vm1, %v2893_v50  ;;  %v1084_v54 = vpop.xlane.xlu0 %1083  ;;  %v1154_v31 = vsel %vm1039_vm1, %v2893_v50, 0.0 }
 0x354   : > { %2904 = vpow2.f32 %v1128_v11  ;;  %v1102_v55 = vsub.f32 %v3589_v36, %v1084_v54  ;;  %2560 = vmatmul.mubr.msk.f32.gmra.mrb[26].mxu0 %vm1039_vm1, %v2891_v47  ;;  %1155 = vadd.xlane.f32.xlu0 %v1154_v31 }
 0x355   : > { %v2895_v32 = vpop.eup %2894  ;;  %v1134_v56 = vmul.f32 1.442695, %v1103_v53 }
 0x356   : > { %v2897_v57 = vpop.eup %2896  ;;  %v1132_v58 = vmul.f32 1.442695, %v1102_v55  ;;  %v1163_v59 = vsel %vm1039_vm1, %v2895_v32, 0.0 }
 0x357   : > { %2906 = vpow2.f32 %v1134_v56  ;;  %1164 = vadd.xlane.f32.xlu1 %v1163_v59  ;;  %2578 = vmatprep.mubr.msk.f32.mxu1 %vm1039_vm1, %v2897_v57  ;;  %v1160_v35 = vsel %vm1039_vm1, %v2897_v57, 0.0 }
 0x358   : > { %2908 = vpow2.f32 %v1132_v58  ;;  %2579 = vmatmul.mubr.msk.f32.vlgmr.msra.gmra.mrb[28].mxu1 %vm1039_vm1, %v2895_v32  ;;  %1161 = vadd.xlane.f32.xlu0 %v1160_v35 }
 0x359   : > { %v2899_v36 = vpop.eup %2898 }
 0x35a   : > { %v2901_v60 = vpop.eup %2900  ;;  %v1169_v61 = vsel %vm1039_vm1, %v2899_v36, 0.0 }
 0x35b   : > { %1170 = vadd.xlane.f32.xlu1 %v1169_v61  ;;  %2581 = vmatprep.mubr.msk.f32.mxu1 %vm1039_vm1, %v2901_v60  ;;  %v1166_v48 = vsel %vm1039_vm1, %v2901_v60, 0.0 }
 0x35c   : > { %2582 = vmatmul.mubr.msk.f32.gmra.mrb[30].mxu1 %vm1039_vm1, %v2899_v36  ;;  %1167 = vadd.xlane.f32.xlu0 %v1166_v48 }
 0x35d   : > { %v2903_v0 = vpop.eup %2902 }
 0x35e   : > { %v2905_v1 = vpop.eup %2904  ;;  %v1175_v4 = vsel %vm1039_vm1, %v2903_v0, 0.0 }
 0x35f   : > { %1176 = vadd.xlane.f32.xlu1 %v1175_v4  ;;  %2584 = vmatprep.mubr.msk.f32.mxu1 %vm1039_vm1, %v2905_v1  ;;  %v1172_v62 = vsel %vm1039_vm1, %v2905_v1, 0.0 }
 0x360   : > { %2585 = vmatmul.mubr.msk.f32.gmra.mrb[32].mxu1 %vm1039_vm1, %v2903_v0  ;;  %1173 = vadd.xlane.f32.xlu0 %v1172_v62 }
 0x361   : > { %v2907_v63 = vpop.eup %2906 }
 0x362   : > { %v2909_v5 = vpop.eup %2908  ;;  %v1181_v8 = vsel %vm1039_vm1, %v2907_v63, 0.0 }
 0x363   : > { %1182 = vadd.xlane.f32.xlu1 %v1181_v8  ;;  %2587 = vmatprep.mubr.msk.f32.mxu1 %vm1039_vm1, %v2909_v5  ;;  %v1178_v9 = vsel %vm1039_vm1, %v2909_v5, 0.0 }
 0x364   : > { %2588 = vmatmul.mubr.msk.f32.gmra.mrb[34].mxu1 %vm1039_vm1, %v2907_v63  ;;  %1179 = vadd.xlane.f32.xlu0 %v1178_v9 }
 0x3c8   : > { %v1141_v33 = vpop.xlane.xlu1 %1140 }
 0x3c9   : > { %v1138_v34 = vpop.xlane.xlu0 %1137  ;;  %2910 = vrcp.f32 %v1141_v33 }
 0x3ca   : > { %2912 = vrcp.f32 %v1138_v34 }
 0x3d1   : > { %v1144_v3 = vpop.xlane.xlu0 %1143 }
 0x3d3   : > { %v2911_v38 = vpop.eup %2910 }
 0x3d4   : > { %v2913_v6 = vpop.eup %2912 }
 0x3d5   : > { %v1147_v37 = vpop.xlane.xlu1 %1146 }
 0x3d6   : > { %2914 = vrcp.f32 %v1147_v37 }
 0x3d7   : > { %2916 = vrcp.f32 %v1144_v3 }
 0x3d9   : > { %v1153_v28 = vpop.xlane.xlu1 %1152 }
 0x3da   : > { %v1150_v39 = vpop.xlane.xlu0 %1149  ;;  %2918 = vrcp.f32 %v1153_v28 }
 0x3db   : > { %2920 = vrcp.f32 %v1150_v39 }
 0x3e0   : > { %v1159_v43 = vpop.xlane.xlu1 %1158  ;;  %v2915_v49 = vpop.eup %2914 }
 0x3e1   : > { %v1156_v44 = vpop.xlane.xlu0 %1155  ;;  %v2917_v11 = vpop.eup %2916  ;;  %2922 = vrcp.f32 %v1159_v43 }
 0x3e2   : > { %2924 = vrcp.f32 %v1156_v44 }
 0x3e4   : > { %v1165_v46 = vpop.xlane.xlu1 %1164  ;;  %v2919_v56 = vpop.eup %2918 }
 0x3e5   : > { %v1162_v47 = vpop.xlane.xlu0 %1161  ;;  %v2921_v58 = vpop.eup %2920  ;;  %2926 = vrcp.f32 %v1165_v46 }
 0x3e6   : > { %2928 = vrcp.f32 %v1162_v47 }
 0x3e8   : > { %v1171_v54 = vpop.xlane.xlu1 %1170 }
 0x3e9   : > { %v1168_v55 = vpop.xlane.xlu0 %1167  ;;  %2930 = vrcp.f32 %v1171_v54 }
 0x3ea   : > { %2932 = vrcp.f32 %v1168_v55 }
 0x3eb   : > { %v2923_v1 = vpop.eup %2922 }
 0x3ec   : > { %v1177_v60 = vpop.xlane.xlu1 %1176  ;;  %v2925_v62 = vpop.eup %2924 }
 0x3ed   : > { %v1174_v48 = vpop.xlane.xlu0 %1173  ;;  %2934 = vrcp.f32 %v1177_v60  ;;  %v3686_v60 = vld [vmem:[%s3828_s6] ss:$0 sm:$0xff] }
 0x3ee   : > { %2936 = vrcp.f32 %v1174_v48 }
 0x3ef   : > { %v2927_v29 = vpop.eup %2926 }
 0x3f0   : > { %v1183_v9 = vpop.xlane.xlu1 %1182  ;;  %v2929_v34 = vpop.eup %2928 }
 0x3f1   : > { %v1180_v30 = vpop.xlane.xlu0 %1179  ;;  %2938 = vrcp.f32 %v1183_v9 }
 0x3f2   : > { %2940 = vrcp.f32 %v1180_v30 }
 0x3f3   : > { %v2931_v39 = vpop.eup %2930 }
 0x40f   : > { %v2552_v40 = vpop.f32.mrb[20].mxu0 }
 0x410   : > { %v1459_v41 = vmul.f32 %v2911_v38, %v2552_v40  ;;  %v1274_v7 = vpop.f32.mrb[21].mxu0 }
 0x411   : > { %v1458_v42 = vmul.f32 %v2913_v6, %v1274_v7 }
 0x412   : > { %v1475_v45 = vadd.f32 %v1459_v41, %v3397_v15  ;;  %v2933_v41 = vpop.eup %2932 }
 0x413   : > { %v1474_v10 = vadd.f32 %v1458_v42, %v3391_v13 }
 0x415   : > { %2594 = vmatprep.mubr.msk.f32.mxu0 %vm433_vm0, %v1474_v10  ;;  %v2935_v10 = vpop.eup %2934 }
 0x416   : > { %2595 = vmatmul.mubr.msk.f32.vlgmr.msra.gmra.mrb[28].mxu0 %vm433_vm0, %v1475_v45  ;;  %v2937_v47 = vpop.eup %2936 }
 0x41a   : > { %v2555_v50 = vpop.f32.mrb[22].mxu0 }
 0x41b   : > { %v1461_v51 = vmul.f32 %v2915_v49, %v2555_v50  ;;  %v1284_v52 = vpop.f32.mrb[23].mxu0 }
 0x41c   : > { %v1460_v53 = vmul.f32 %v2917_v11, %v1284_v52  ;;  %v2939_v52 = vpop.eup %2938 }
 0x41d   : > { %v1477_v32 = vadd.f32 %v1461_v51, %v3409_v19 }
 0x41e   : > { %v1476_v31 = vadd.f32 %v1460_v53, %v3403_v17 }
 0x420   : > { %v2558_v57 = vpop.f32.mrb[24].mxu0  ;;  %2597 = vmatprep.mubr.msk.f32.mxu0 %vm433_vm0, %v1476_v31  ;;  %v2941_v31 = vpop.eup %2940 }
 0x421   : > { %v1463_v59 = vmul.f32 %v2919_v56, %v2558_v57  ;;  %v1294_v35 = vpop.f32.mrb[25].mxu0  ;;  %2598 = vmatmul.mubr.msk.f32.gmra.mrb[30].mxu0 %vm433_vm0, %v1477_v32 }
 0x422   : > { %v1462_v36 = vmul.f32 %v2921_v58, %v1294_v35  ;;  %v3145_v35 = vmov 0.0|0.0  }
 0x423   : > { %v1479_v0 = vadd.f32 %v1463_v59, %v3423_v23  ;;  %2746 = vmatprep.subr.bf16.mxu1 %v3145_v35  ;;  %2762 = vmatprep.subr.bf16.mxu0 %v3145_v35 }
 0x424   : > { %v1478_v61 = vadd.f32 %v1462_v36, %v3415_v21  ;;  %v3147_v36 = vmov 0.0  }
 0x425   : > { %2634 = vmatprep.mubr.msk.f32.mxu1 %vm3146_vm2, %v3147_v36 }
 0x426   : > { %2600 = vmatprep.mubr.msk.f32.mxu0 %vm433_vm0, %v1478_v61 }
 0x427   : > { %2601 = vmatmul.mubr.msk.f32.gmra.mrb[32].mxu0 %vm433_vm0, %v1479_v0  ;;  %v2561_v4 = vpop.f32.mrb[26].mxu0 }
 0x428   : > { %v1465_v63 = vmul.f32 %v2923_v1, %v2561_v4  ;;  %v1304_v5 = vpop.f32.mrb[27].mxu0 }
 0x429   : > { %v1464_v8 = vmul.f32 %v2925_v62, %v1304_v5 }
 0x42a   : > { %v1481_v37 = vadd.f32 %v1465_v63, %v3439_v27 }
 0x42b   : > { %v1480_v2 = vadd.f32 %v1464_v8, %v3431_v25  ;;  %v2580_v33 = vpop.f32.mrb[28].mxu1 }
 0x42c   : > { %v1467_v3 = vmul.f32 %v2927_v29, %v2580_v33  ;;  %v1403_v28 = vpop.f32.mrb[29].mxu1 }
 0x42d   : > { %v1466_v38 = vmul.f32 %v2929_v34, %v1403_v28  ;;  %2603 = vmatprep.mubr.msk.f32.mxu0 %vm433_vm0, %v1480_v2 }
 0x42e   : > { %2604 = vmatmul.mubr.msk.f32.gmra.mrb[34].mxu0 %vm433_vm0, %v1481_v37  ;;  %v1483_v7 = vadd.f32 %v1467_v3, %v3395_v14 }
 0x42f   : > { %v1482_v40 = vadd.f32 %v1466_v38, %v3389_v12  ;;  %v2583_v6 = vpop.f32.mrb[30].mxu1 }
 0x430   : > { %v1469_v42 = vmul.f32 %v2931_v39, %v2583_v6  ;;  %v1413_v43 = vpop.f32.mrb[31].mxu1 }
 0x431   : > { %v1468_v44 = vmul.f32 %v2933_v41, %v1413_v43  ;;  %2606 = vmatprep.mubr.msk.f32.mxu0 %vm433_vm0, %v1482_v40 }
 0x432   : > { %2607 = vmatmul.mubr.msk.f32.gmra.mrb[36].mxu0 %vm433_vm0, %v1483_v7  ;;  %v1485_v49 = vadd.f32 %v1469_v42, %v3407_v18 }
 0x433   : > { %v1484_v45 = vadd.f32 %v1468_v44, %v3401_v16  ;;  %v2586_v46 = vpop.f32.mrb[32].mxu1 }
 0x434   : > { %v1471_v50 = vmul.f32 %v2935_v10, %v2586_v46  ;;  %v1423_v11 = vpop.f32.mrb[33].mxu1 }
 0x435   : > { %v1470_v51 = vmul.f32 %v2937_v47, %v1423_v11  ;;  %2609 = vmatprep.mubr.msk.f32.mxu0 %vm433_vm0, %v1484_v45 }
 0x436   : > { %2610 = vmatmul.mubr.msk.f32.gmra.mrb[38].mxu0 %vm433_vm0, %v1485_v49  ;;  %v1487_v55 = vadd.f32 %v1471_v50, %v3421_v22 }
 0x437   : > { %v1486_v53 = vadd.f32 %v1470_v51, %v3413_v20  ;;  %v2589_v54 = vpop.f32.mrb[34].mxu1 }
 0x438   : > { %v1473_v32 = vmul.f32 %v2939_v52, %v2589_v54  ;;  %v1433_v56 = vpop.f32.mrb[35].mxu1 }
 0x439   : > { %v1472_v57 = vmul.f32 %v2941_v31, %v1433_v56  ;;  %2612 = vmatprep.mubr.msk.f32.mxu0 %vm433_vm0, %v1486_v53 }
 0x43a   : > { %2613 = vmatmul.mubr.msk.f32.gmra.mrb[40].mxu0 %vm433_vm0, %v1487_v55  ;;  %v1489_v59 = vadd.f32 %v1473_v32, %v3437_v26 }
 0x43b   : > { %v1488_v58 = vadd.f32 %v1472_v57, %v3429_v24 }
 0x43d   : > { %2615 = vmatprep.mubr.msk.f32.mxu0 %vm433_vm0, %v1488_v58 }
 0x43e   : > { %2616 = vmatmul.mubr.msk.f32.gmra.mrb[42].mxu0 %vm433_vm0, %v1489_v59 }
 0x43f   : > { %2653 = vmatprep.mubr.msk.f32.mxu0 %vm3146_vm2, %v3147_v36 }
 0x4e9   : > { %v2596_v61 = vpop.f32.mrb[28].mxu0 }
 0x4ea   : > { %v1619_v48 = vadd.f32 %v2596_v61, %v3686_v60  ;;  %v1613_v0 = vpop.f32.mrb[29].mxu0 }
 0x4eb   : > { %v1614_v1 = vadd.f32 %v3686_v60, %v1613_v0 }
 0x4ec   : > { %2942 = vtanh.f32 %v1619_v48 }
 0x4ed   : > { %2944 = vtanh.f32 %v1614_v1 }
 0x4f4   : > { %v2599_v4 = vpop.f32.mrb[30].mxu0 }
 0x4f5   : > { %v1629_v62 = vadd.f32 %v2599_v4, %v3686_v60  ;;  %v1623_v63 = vpop.f32.mrb[31].mxu0 }
 0x4f6   : > { %v2943_v5 = vpop.eup %2942  ;;  %v1624_v8 = vadd.f32 %v3686_v60, %v1623_v63 }
 0x4f7   : > { %v2945_v9 = vpop.eup %2944  ;;  %2946 = vtanh.f32 %v1629_v62 }
 0x4f8   : > { %2948 = vtanh.f32 %v1624_v8  ;;  %v2747_v30 = vpack.c.bf16 %v2943_v5, %v2945_v9  ;;  %v2779_v8 = vpack.c.bf16 %v3397_v15, %v3391_v13  ;;  %v2785_v15 = vpack.c.bf16 %v3423_v23, %v3415_v21 }
 0x4f9   : > { %v2797_v21 = vpack.c.bf16 %v3421_v22, %v3413_v20 }
 0x4fa   : > { %v2602_v2 = vpop.f32.mrb[32].mxu0  ;;  %2749 = vmatpush3.bf16.xpose.msk.msra.mxu1 %vm3694_vm4, %v2747_v30 }
 0x4fb   : > { %v1639_v33 = vadd.f32 %v2602_v2, %v3686_v60  ;;  %v1633_v34 = vpop.f32.mrb[33].mxu0  ;;  %2750 = vmatprep.subr.bf16.mxu1 %v3145_v35 }
 0x4fc   : > { %v1634_v37 = vadd.f32 %v3686_v60, %v1633_v34  ;;  %v2788_v34 = vpack.c.bf16 %v3439_v27, %v3431_v25 }
 0x4fd   : > { %2950 = vtanh.f32 %v1639_v33  ;;  %v2782_v33 = vpack.c.bf16 %v3409_v19, %v3403_v17  ;;  %v2791_v17 = vpack.c.bf16 %v3395_v14, %v3389_v12  ;;  %v2794_v19 = vpack.c.bf16 %v3407_v18, %v3401_v16 }
 0x4fe   : > { %2952 = vtanh.f32 %v1634_v37  ;;  %v2800_v12 = vpack.c.bf16 %v3437_v26, %v3429_v24 }
 0x501   : > { %v2947_v3 = vpop.eup %2946  ;;  %v2605_v28 = vpop.f32.mrb[34].mxu0 }
 0x502   : > { %v2949_v38 = vpop.eup %2948  ;;  %v1649_v39 = vadd.f32 %v2605_v28, %v3686_v60  ;;  %v1643_v40 = vpop.f32.mrb[35].mxu0 }
 0x503   : > { %v1644_v6 = vadd.f32 %v3686_v60, %v1643_v40  ;;  %v2751_v41 = vpack.c.bf16 %v2947_v3, %v2949_v38 }
 0x504   : > { %2954 = vtanh.f32 %v1649_v39 }
 0x505   : > { %2956 = vtanh.f32 %v1644_v6  ;;  %v2608_v7 = vpop.f32.mrb[36].mxu0  ;;  %2753 = vmatpush3.bf16.xpose.msk.msra.mxu1 %vm3694_vm4, %v2751_v41 }
 0x506   : > { %v1659_v42 = vadd.f32 %v2608_v7, %v3686_v60  ;;  %v1653_v43 = vpop.f32.mrb[37].mxu0  ;;  %2754 = vmatprep.subr.bf16.mxu1 %v3145_v35 }
 0x507   : > { %v2951_v44 = vpop.eup %2950  ;;  %v1654_v10 = vadd.f32 %v3686_v60, %v1653_v43 }
 0x508   : > { %v2953_v45 = vpop.eup %2952  ;;  %2958 = vtanh.f32 %v1659_v42 }
 0x509   : > { %2960 = vtanh.f32 %v1654_v10  ;;  %v2611_v46 = vpop.f32.mrb[38].mxu0  ;;  %v2755_v47 = vpack.c.bf16 %v2951_v44, %v2953_v45 }
 0x50a   : > { %v1669_v49 = vadd.f32 %v2611_v46, %v3686_v60  ;;  %v1663_v50 = vpop.f32.mrb[39].mxu0 }
 0x50b   : > { %v1664_v11 = vadd.f32 %v3686_v60, %v1663_v50 }
 0x50c   : > { %2962 = vtanh.f32 %v1669_v49 }
 0x50d   : > { %2964 = vtanh.f32 %v1664_v11  ;;  %v2614_v51 = vpop.f32.mrb[40].mxu0  ;;  %2757 = vmatpush3.bf16.xpose.msk.msra.mxu1 %vm3694_vm4, %v2755_v47 }
 0x50e   : > { %v2955_v52 = vpop.eup %2954  ;;  %v1679_v53 = vadd.f32 %v2614_v51, %v3686_v60  ;;  %v1673_v54 = vpop.f32.mrb[41].mxu0  ;;  %2758 = vmatprep.subr.bf16.mxu1 %v3145_v35 }
 0x50f   : > { %v2957_v31 = vpop.eup %2956  ;;  %v1674_v55 = vadd.f32 %v3686_v60, %v1673_v54 }
 0x510   : > { %2966 = vtanh.f32 %v1679_v53  ;;  %v2759_v32 = vpack.c.bf16 %v2955_v52, %v2957_v31 }
 0x511   : > { %2968 = vtanh.f32 %v1674_v55  ;;  %v2617_v56 = vpop.f32.mrb[42].mxu0 }
 0x512   : > { %v2959_v57 = vpop.eup %2958  ;;  %v1689_v58 = vadd.f32 %v2617_v56, %v3686_v60  ;;  %v1683_v59 = vpop.f32.mrb[43].mxu0 }
 0x513   : > { %v2961_v61 = vpop.eup %2960  ;;  %v1684_v48 = vadd.f32 %v3686_v60, %v1683_v59  ;;  %v1708_v60 = vld [vmem:[%s3829_s7] sm:$0x1] }
 0x514   : > { %2970 = vtanh.f32 %v1689_v58  ;;  %v2763_v0 = vpack.c.bf16 %v2959_v57, %v2961_v61 }
 0x515   : > { %2972 = vtanh.f32 %v1684_v48  ;;  %2761 = vmatpush3.bf16.xpose.msk.msra.mxu1 %vm3694_vm4, %v2759_v32 }
 0x516   : > { %v2963_v1 = vpop.eup %2962  ;;  %2765 = vmatpush3.bf16.xpose.msk.msra.mxu0 %vm3694_vm4, %v2763_v0  ;;  %2778 = vmatprep.subr.bf16.mxu1 %v3145_v35 }
 0x517   : > { %v2965_v4 = vpop.eup %2964  ;;  %2766 = vmatprep.subr.bf16.mxu0 %v3145_v35 }
 0x518   : > { %v2767_v62 = vpack.c.bf16 %v2963_v1, %v2965_v4 }
 0x51a   : > { %v2967_v63 = vpop.eup %2966 }
 0x51b   : > { %v2969_v5 = vpop.eup %2968 }
 0x51c   : > { %2635 = vmatmul.mubr.msk.f32.vlgmr.msra.gmra.mrb[36].mxu1 %vm1709_vm3, %v1708_v60  ;;  %v2771_v9 = vpack.c.bf16 %v2967_v63, %v2969_v5 }
 0x51d   : > { %2780 = vmatpush3.bf16.msra.mxu1 %v2779_v8  ;;  %2672 = vmatprep.mubr.msk.f32.mxu1 %vm3146_vm2, %v3147_v36 }
 0x51e   : > { %v2971_v30 = vpop.eup %2970  ;;  %2769 = vmatpush3.bf16.xpose.msk.msra.mxu0 %vm3694_vm4, %v2767_v62  ;;  %2781 = vmatprep.subr.bf16.mxu1 %v3145_v35 }
 0x51f   : > { %v2973_v2 = vpop.eup %2972  ;;  %2770 = vmatprep.subr.bf16.mxu0 %v3145_v35 }
 0x520   : > { %v2775_v13 = vpack.c.bf16 %v2971_v30, %v2973_v2 }
 0x521   : > { %2783 = vmatpush3.bf16.msra.mxu1 %v2782_v33 }
 0x522   : > { %2784 = vmatprep.subr.bf16.mxu1 %v3145_v35 }
 0x525   : > { %2786 = vmatpush3.bf16.msra.mxu1 %v2785_v15 }
 0x526   : > { %2773 = vmatpush3.bf16.xpose.msk.msra.mxu0 %vm3694_vm4, %v2771_v9  ;;  %2787 = vmatprep.subr.bf16.mxu1 %v3145_v35 }
 0x527   : > { %2774 = vmatprep.subr.bf16.mxu0 %v3145_v35 }
 0x529   : > { %2789 = vmatpush3.bf16.msra.mxu1 %v2788_v34 }
 0x52e   : > { %2777 = vmatpush3.bf16.xpose.msk.msra.mxu0 %vm3694_vm4, %v2775_v13 }
 0x52f   : > { %2790 = vmatprep.subr.bf16.mxu0 %v3145_v35 }
 0x535   : > { %2654 = vmatmul.mubr.msk.f32.vlgmr.msra.gmra.mrb[44].mxu0 %vm1709_vm3, %v1708_v60 }
 0x536   : > { %2792 = vmatpush3.bf16.msra.mxu0 %v2791_v17  ;;  %2691 = vmatprep.mubr.msk.f32.mxu0 %vm3146_vm2, %v3147_v36 }
 0x537   : > { %2793 = vmatprep.subr.bf16.mxu0 %v3145_v35 }
 0x53a   : > { %2795 = vmatpush3.bf16.msra.mxu0 %v2794_v19 }
 0x53b   : > { %2796 = vmatprep.subr.bf16.mxu0 %v3145_v35 }
 0x53e   : > { %2798 = vmatpush3.bf16.msra.mxu0 %v2797_v21 }
 0x53f   : > { %2799 = vmatprep.subr.bf16.mxu0 %v3145_v35 }
 0x542   : > { %2801 = vmatpush3.bf16.msra.mxu0 %v2800_v12 }
 0x5ef   : > { %v1803_v14 = vpop.f32.mrb[36].mxu1 }
 0x5f0   : > { %v1902_v23 = vsel %vm1901_vm5, %v1803_v14, -inf  ;;  %v2636_v25 = vpop.f32.mrb[37].mxu1 }
 0x5f1   : > { %1903 = vmax.xlane.f32.xlu0 %v1902_v23 }
 0x608   : > { %v1897_v16 = vpop.f32.mrb[44].mxu0 }
 0x609   : > { %v2655_v18 = vpop.f32.mrb[45].mxu0  ;;  %v1905_v27 = vsel %vm1901_vm5, %v1897_v16, -inf }
 0x60a   : > { %1906 = vmax.xlane.f32.xlu1 %v1905_v27 }
 0x67e   : > { %v1904_v36 = vpop.xlane.xlu0 %1903 }
 0x67f   : > { %v1908_v20 = vsub.f32 %v1803_v14, %v1904_v36 }
 0x681   : > { %v1910_v22 = vmul.f32 1.442695, %v1908_v20 }
 0x683   : > { %2974 = vpow2.f32 %v1910_v22 }
 0x68d   : > { %v2975_v35 = vpop.eup %2974 }
 0x68e   : > { %2673 = vmatmul.mubr.msk.f32.vlgmr.msra.gmra.mrb[38].mxu1 %vm1039_vm1, %v2975_v35  ;;  %v1914_v24 = vsel %vm1901_vm5, %v2975_v35, 0.0 }
 0x68f   : > { %1915 = vadd.xlane.f32.xlu0 %v1914_v24 }
 0x697   : > { %v1907_v26 = vpop.xlane.xlu1 %1906 }
 0x698   : > { %v1909_v29 = vsub.f32 %v1897_v16, %v1907_v26 }
 0x69a   : > { %v1912_v37 = vmul.f32 1.442695, %v1909_v29 }
 0x69c   : > { %2976 = vpow2.f32 %v1912_v37 }
 0x6a6   : > { %v2977_v3 = vpop.eup %2976 }
 0x6a7   : > { %2692 = vmatmul.mubr.msk.f32.vlgmr.msra.gmra.mrb[46].mxu0 %vm1039_vm1, %v2977_v3  ;;  %v1917_v28 = vsel %vm1901_vm5, %v2977_v3, 0.0 }
 0x6a8   : > { %1918 = vadd.xlane.f32.xlu1 %v1917_v28 }
 0x71c   : > { %v1916_v38 = vpop.xlane.xlu0 %1915 }
 0x71d   : > { %2978 = vrcp.f32 %v1916_v38 }
 0x727   : > { %v2979_v39 = vpop.eup %2978 }
 0x735   : > { %v1919_v7 = vpop.xlane.xlu1 %1918 }
 0x736   : > { %2980 = vrcp.f32 %v1919_v7 }
 0x740   : > { %v2981_v42 = vpop.eup %2980 }
 0x761   : > { %v1989_v40 = vpop.f32.mrb[38].mxu1 }
 0x762   : > { %v2068_v6 = vmul.f32 %v2979_v39, %v1989_v40  ;;  %v2674_v41 = vpop.f32.mrb[39].mxu1 }
 0x764   : > { %2071 = vst.msk [vmem:[%s353_s13] sm:$0x1] %vm2070_vm6, %v2068_v6 }
 0x77a   : > { %v2062_v43 = vpop.f32.mrb[46].mxu0 }
 0x77b   : > { %v2069_v44 = vmul.f32 %v2981_v42, %v2062_v43  ;;  %v2693_v10 = vpop.f32.mrb[47].mxu0 }
 0x77d   : > { %2072 = vst.msk [vmem:[%s353_s13 + $0x1] sm:$0x1] %vm2070_vm6, %v2069_v44 }
 0x77e   : > { %3081 = shalt.err (!%p3078_p1)
}
 0x77f   : > { %s3082_s18 = scalar_lea.hbm %s3778_s15, 32  ;;  %s3086_s17 = scalar_lea.hbm %s3830_s8, 64 }
 0x780   : > { %p3083_p13 = scmp.ne.s32.totalorder %s3778_s15, %s3082_s18  ;;  %p3087_p4 = scmp.lt.u32.totalorder %s3778_s15, %s3830_s8 }
 0x781   : > { %p3088_p5 = scmp.lt.u32.totalorder %s3086_s17, %s3082_s18  ;;  %p3090_p8 = scmp.lt.u32.totalorder %s3082_s18, %s3778_s15 }
 0x782   : > { %p3084_p6 = pnand %p3083_p13, %p3850_p0 }
 0x783   : > { %p3089_p11 = por %p3088_p5, %p3087_p4 }
 0x784   : > { %p3085_p10 = pneg %p3084_p6 }
 0x785   : > { %p3091_p2 = por %p3090_p8, %p3089_p11 }
 0x787   : > { %p3092_p3 = pnand %p3091_p2, %p3085_p10 }
 0x789   : > { %3095 = shalt.err (!%p3092_p3)
}
 0x78a   : > { %s3149_s26 = smov 16   ;;  %s3150_s9 = smov 1  }
 0x78b   : > { %2814 = dma.vmem_to_hbm [thread:$0]  (%p3850_p0), %s3773_s10, 32, %s3778_s15, %s2074_s14, %s3149_s26, %s3149_s26, %s3150_s9  }
 0x78c PF: > { %s2102_s24 = sand.u32 1, %s3126_s27   ;;  %p3851_p7 = scmp.ne.s32.totalorder %s3837_s12, 0 }
 0x78d   : > { %p3852_p9 = scmp.ge.s32.totalorder %s3138_s30, 2  ;;  %s2103_s25 = scalar_lea.sflag [#allocation4], %s2102_s24 }
 0x78f   : > { %p2828_p12 = pnand %p3852_p9, %p3851_p7 }
 0x791   : > { %3121 = dma.done.wait (!%p2828_p12), %s2103_s25, 32  }
 0x792   : > { %3123 = vsyncadd (!%p2828_p12), %s2103_s25, 4294967264  ;;  %p22_p1 = scmp.ge.s32.totalorder %s3312_s16, 4   ;;  %s3853_s27 = smov %s3130_s28 }
 0x793   : > { %s3854_s28 = smov %s3134_s29  ;;  %s3855_s29 = smov %s3328_s23 }
 0x794   : > { %s3856_s30 = smov %s3312_s16  ;;  %24 = sbr.rel (!%p22_p1) target bundleno = 6 (0x6), region = 105 }
 0x79b   :  { %2108 = vsyncpa [#allocation3], 1 }
 0x79c   :  { %2110 = vsyncpa [#allocation3 + $0x1], 1 }
 0x79d   :  { %2111 = vsyncpa [#allocation6], 1 }
 0x79e   :  { %2112 = vsyncpa [#allocation4], 1 }
 0x79f   :  { %2114 = vsyncpa [#allocation4 + $0x1], 1 }

</bundles_post_ra>
